<compile_context>
chip_gen: v5e
topology: v5e:2x2
jax: 0.10.0
libtpu: 0.0.40
codegen_flags: <defaults>
</compile_context>

<pallas_src>
import numpy as np
import jax
import jax.numpy as jnp
from jax.experimental import pallas as pl
from jax.experimental.pallas import tpu as pltpu


# rows of the (8, 128) f32 small-parameter pack
(_ROW_BE0, _ROW_BE1, _ROW_BHEAD, _ROW_BD0,
 _ROW_BD1, _ROW_BD2, _ROW_W0Y, _ROW_WD2) = range(8)


def _round_up(x, m):
    return -(-int(x) // m) * m


def _tensorcores_per_chip():
    """Best-effort detection: v7x has 2 TensorCores/chip, v5e/v6e have 1."""
    try:
        kind = jax.devices()[0].device_kind.lower()
    except Exception:
        return 1
    return 2 if "v7" in kind else 1


def _choose_tile(B, block_rows):
    """Batch tile: multiple of 8 (sublane), >=2 grid steps on multi-TC chips."""
    br = _round_up(max(int(block_rows), 8), 8)
    tb = B if B <= br else br        # full-array block is always legal
    if _tensorcores_per_chip() > 1 and B >= 16 and pl.cdiv(B, tb) < 2:
        tb = _round_up(pl.cdiv(B, 2), 8)
    return tb


def _vmem_limit_bytes(tb, act_w, out_w):
    """Explicit scoped-VMEM request: streams + intermediates, 2x headroom,
    capped below v7x's 64 MiB physical per-TC VMEM."""
    lane_pad = lambda w: _round_up(w, 128)
    stream = 4 * tb * (lane_pad(act_w) + lane_pad(out_w)) * 2   # dbl-buffered f32 I/O
    interm = 4 * tb * 128 * 10                                  # h/head/z/d/cats_part + casts
    need = stream + interm + (2 << 20)                          # + weights/pack slack
    return int(min(48 << 20, max(32 << 20, 2 * need)))


# ----------------------------------------------------------------------------
# Kernel factory (dims baked in as Python statics)
# ----------------------------------------------------------------------------
def _make_kernel(h0e, h1e, lat, h0d, h1d, csum):
    f32 = jnp.float32
    bf16 = jnp.bfloat16

    def kernel(act_ref, pack_ref,
               wcats_ref, we1_ref, whead_ref, wd0z_ref, wd1_ref,
               out_ref):
        p = pack_ref[...]                                   # (8,128) f32 resident
        be0   = p[_ROW_BE0:_ROW_BE0 + 1, :h0e]
        be1   = p[_ROW_BE1:_ROW_BE1 + 1, :h1e]
        bhead = p[_ROW_BHEAD:_ROW_BHEAD + 1, :2 * lat]
        bd0   = p[_ROW_BD0:_ROW_BD0 + 1, :h0d]
        bd1   = p[_ROW_BD1:_ROW_BD1 + 1, :h1d]
        bd2   = p[_ROW_BD2:_ROW_BD2 + 1, :1]
        w0y   = p[_ROW_W0Y:_ROW_W0Y + 1, :h0e]              # we0 row for y
        wd2r  = p[_ROW_WD2:_ROW_WD2 + 1, :h1d]              # wd2 as a row

        act = act_ref[...]                                  # (TB, 1+csum+lat) f32
        y = act[:, 0:1]
        cats = act[:, 1:1 + csum]
        eps = act[:, 1 + csum:1 + csum + lat]
        cats_b = cats.astype(bf16)

        # one fused matmul for both layers that consume the one-hots:
        #   cats @ [we0_c | wd0_c] -> lane-slice encoder-0 / decoder-0 partials
        cats_part = jnp.dot(cats_b, wcats_ref[...], preferred_element_type=f32)
        cats_e = cats_part[:, :h0e]
        cats_d = cats_part[:, h0e:h0e + h0d]

        # encoder layer 0: [y|cats] @ we0 without any concat
        #   (y column -> VPU broadcast multiply, one-hot block -> MXU matmul)
        h = jnp.maximum(y * w0y + cats_e + be0, 0.0)

        # encoder layer 1
        h = jnp.maximum(
            jnp.dot(h.astype(bf16), we1_ref[...],
                    preferred_element_type=f32) + be1, 0.0)

        # fused mu / log_var heads: single matmul, lane-contiguous [mu|log_var]
        head = jnp.dot(h.astype(bf16), whead_ref[...],
                       preferred_element_type=f32) + bhead
        mu = head[:, :lat]
        log_var = head[:, lat:]

        # reparameterize: z = eps * exp(0.5*log_var) + mu   (f32 EUP exp)
        z = eps * jnp.exp(0.5 * log_var) + mu

        # regressor layer 0: [z|cats] @ wd0 without concat
        d = jnp.maximum(
            jnp.dot(z.astype(bf16), wd0z_ref[...], preferred_element_type=f32)
            + cats_d + bd0, 0.0)

        # regressor layer 1
        d = jnp.maximum(
            jnp.dot(d.astype(bf16), wd1_ref[...],
                    preferred_element_type=f32) + bd1, 0.0)

        # final Linear(h1d, 1) + ReLU on VPU/XLU (skip N=1 MXU push)
        pred = jnp.maximum(
            jnp.sum(d * wd2r, axis=-1, keepdims=True) + bd2, 0.0)

        # single packed lane-contiguous output: [mu | log_var | pred]
        out_ref[:, :2 * lat] = head
        out_ref[:, 2 * lat:2 * lat + 1] = pred

    return kernel


# ----------------------------------------------------------------------------
# Wrapper
# ----------------------------------------------------------------------------
def cvr_forward(y, cats, eps, kp, *, block_rows=2048):
    """Mirrors cVariationalRegressor.forward; returns (pred_y, y, mu, log_var)."""
    B = y.shape[0]
    lat = kp["latent_dim"]
    csum = kp["csum"]
    h0e, h1e, h0d, h1d = kp["dims"]
    out_w = 2 * lat + 1
    act_w = 1 + csum + lat

    y = y.astype(jnp.float32).reshape(B, 1)
    cats_cat = jnp.concatenate(list(cats), axis=1).astype(jnp.float32)
    eps = eps.astype(jnp.float32)
    # one packed activation stream -> a single input DMA per grid step
    act = jnp.concatenate([y, cats_cat, eps], axis=1)       # (B, act_w) f32

    tb = _choose_tile(B, block_rows)
    grid = (pl.cdiv(B, tb),)

    kernel = _make_kernel(h0e, h1e, lat, h0d, h1d, csum)

    def rows(width):                       # batch-tiled activations / outputs
        return pl.BlockSpec((tb, width), lambda i: (i, 0))

    def resident(arr):                     # weights: one block, stays in VMEM
        return pl.BlockSpec(arr.shape, lambda i: (0, 0))

    weights = (kp["pack"], kp["w_cats"], kp["we1"], kp["w_head"],
               kp["wd0_z"], kp["wd1"])

    in_specs = [rows(act_w)] + [resident(w) for w in weights]

    packed = pl.pallas_call(
        kernel,
        grid=grid,
        in_specs=in_specs,
        out_specs=rows(out_w),
        out_shape=jax.ShapeDtypeStruct((B, out_w), jnp.float32),
        compiler_params=pltpu.CompilerParams(
            dimension_semantics=("parallel",),
            vmem_limit_bytes=_vmem_limit_bytes(tb, act_w, out_w)),
    )(act, *weights)

    mu = packed[:, :lat]
    log_var = packed[:, lat:2 * lat]
    pred_y = packed[:, 2 * lat:]
    return pred_y, y, mu, log_var


# ----------------------------------------------------------------------------
# Parameter init (xavier_uniform_ weights, bias = 0.01) + kernel packing
# ----------------------------------------------------------------------------
def _xavier(key, fan_in, fan_out):
    a = float(np.sqrt(6.0 / (fan_in + fan_out)))
    # stored (in, out) so the kernel computes x @ W
    return jax.random.uniform(key, (fan_in, fan_out), jnp.float32, -a, a)


def init_raw_params(key, latent_dim, class_sizes, hidden_enc, hidden_dec):
    ks = jax.random.split(key, 7)
    csum = int(np.sum(class_sizes))
    f32 = jnp.float32
    raw = {}
    raw["we0"] = _xavier(ks[0], 1 + csum, hidden_enc[0])
    raw["be0"] = jnp.full((hidden_enc[0],), 0.01, f32)
    raw["we1"] = _xavier(ks[1], hidden_enc[0], hidden_enc[1])
    raw["be1"] = jnp.full((hidden_enc[1],), 0.01, f32)
    raw["wmu"] = _xavier(ks[2], hidden_enc[1], latent_dim)
    raw["bmu"] = jnp.full((latent_dim,), 0.01, f32)
    raw["wvar"] = _xavier(ks[3], hidden_enc[1], latent_dim)
    raw["bvar"] = jnp.full((latent_dim,), 0.01, f32)
    raw["wd0"] = _xavier(ks[4], latent_dim + csum, hidden_dec[0])
    raw["bd0"] = jnp.full((hidden_dec[0],), 0.01, f32)
    raw["wd1"] = _xavier(ks[5], hidden_dec[0], hidden_dec[1])
    raw["bd1"] = jnp.full((hidden_dec[1],), 0.01, f32)
    raw["wd2"] = _xavier(ks[6], hidden_dec[1], 1)
    raw["bd2"] = jnp.full((1,), 0.01, f32)
    return raw


def prepare_params(raw, latent_dim, class_sizes):
    """Split / fuse / cast the raw (PyTorch-layout) params into kernel params."""
    csum = int(np.sum(class_sizes))
    h0e = raw["we0"].shape[1]
    h1e = raw["we1"].shape[1]
    h0d = raw["wd0"].shape[1]
    h1d = raw["wd1"].shape[1]
    # the (8,128) param pack assumes every small vector fits in one vreg row,
    # and the fused cats weight assumes h0e + h0d fits the lane axis
    assert max(h0e, h1e, h0d, h1d, 2 * latent_dim) <= 128
    assert h0e + h0d <= 128

    pack = jnp.zeros((8, 128), jnp.float32)
    pack = pack.at[_ROW_BE0, :h0e].set(raw["be0"])
    pack = pack.at[_ROW_BE1, :h1e].set(raw["be1"])
    pack = pack.at[_ROW_BHEAD, :2 * latent_dim].set(
        jnp.concatenate([raw["bmu"], raw["bvar"]]))
    pack = pack.at[_ROW_BD0, :h0d].set(raw["bd0"])
    pack = pack.at[_ROW_BD1, :h1d].set(raw["bd1"])
    pack = pack.at[_ROW_BD2, :1].set(raw["bd2"])
    pack = pack.at[_ROW_W0Y, :h0e].set(raw["we0"][0, :])
    pack = pack.at[_ROW_WD2, :h1d].set(raw["wd2"][:, 0])

    bf16 = jnp.bfloat16
    return {
        "latent_dim": latent_dim,
        "csum": csum,
        "dims": (h0e, h1e, h0d, h1d),
        "pack": pack,
        # both one-hot-consuming weight blocks fused along N: [we0_c | wd0_c]
        "w_cats": jnp.concatenate(
            [raw["we0"][1:, :], raw["wd0"][latent_dim:, :]], axis=1).astype(bf16),
        "we1": raw["we1"].astype(bf16),
        "w_head": jnp.concatenate([raw["wmu"], raw["wvar"]], axis=1).astype(bf16),
        "wd0_z": raw["wd0"][:latent_dim, :].astype(bf16),
        "wd1": raw["wd1"].astype(bf16),
    }


# ----------------------------------------------------------------------------
# Pure-JAX references
# ----------------------------------------------------------------------------
def cvr_forward_ref_mirror(y, cats, eps, kp):
    """Reference with the exact kernel math (same splits & bf16 rounding)."""
    f32, bf16 = jnp.float32, jnp.bfloat16
    lat = kp["latent_dim"]
    h0e, h1e, h0d, h1d = kp["dims"]
    p = kp["pack"]
    cats_cat = jnp.concatenate(list(cats), axis=1)
    cats_b = cats_cat.astype(bf16)

    be0, be1 = p[_ROW_BE0, :h0e], p[_ROW_BE1, :h1e]
    bhead, bd0 = p[_ROW_BHEAD, :2 * lat], p[_ROW_BD0, :h0d]
    bd1, bd2 = p[_ROW_BD1, :h1d], p[_ROW_BD2, :1]
    w0y, wd2r = p[_ROW_W0Y, :h0e], p[_ROW_WD2, :h1d]

    cats_part = jnp.dot(cats_b, kp["w_cats"], preferred_element_type=f32)
    cats_e, cats_d = cats_part[:, :h0e], cats_part[:, h0e:h0e + h0d]

    h = jax.nn.relu(y * w0y + cats_e + be0)
    h = jax.nn.relu(jnp.dot(h.astype(bf16), kp["we1"],
                            preferred_element_type=f32) + be1)
    head = jnp.dot(h.astype(bf16), kp["w_head"],
                   preferred_element_type=f32) + bhead
    mu, log_var = head[:, :lat], head[:, lat:]
    z = eps * jnp.exp(0.5 * log_var) + mu
    d = jax.nn.relu(jnp.dot(z.astype(bf16), kp["wd0_z"], preferred_element_type=f32)
                    + cats_d + bd0)
    d = jax.nn.relu(jnp.dot(d.astype(bf16), kp["wd1"],
                            preferred_element_type=f32) + bd1)
    pred = jax.nn.relu(jnp.sum(d * wd2r, axis=-1, keepdims=True) + bd2)
    return pred, y, mu, log_var


def cvr_forward_ref_f32(y, cats, eps, raw):
    """PyTorch-faithful full-f32 reference (loose sanity check for bf16 path)."""
    x = jnp.concatenate([y] + list(cats), axis=1)
    h = jax.nn.relu(x @ raw["we0"] + raw["be0"])
    h = jax.nn.relu(h @ raw["we1"] + raw["be1"])
    mu = h @ raw["wmu"] + raw["bmu"]
    log_var = h @ raw["wvar"] + raw["bvar"]
    z = eps * jnp.exp(0.5 * log_var) + mu
    zc = jnp.concatenate([z] + list(cats), axis=1)
    d = jax.nn.relu(zc @ raw["wd0"] + raw["bd0"])
    d = jax.nn.relu(d @ raw["wd1"] + raw["bd1"])
    pred = jax.nn.relu(d @ raw["wd2"] + raw["bd2"])
    return pred, y, mu, log_var


# ----------------------------------------------------------------------------
if __name__ == "__main__":
    latent_dim = 8
    class_sizes = [3, 4]
    hidden_enc = [32, 32]
    hidden_dec = [32, 32]
    B = 128

    root = jax.random.PRNGKey(0)
    k_param, k_y, k_c0, k_c1, k_eps = jax.random.split(root, 5)

    raw = init_raw_params(k_param, latent_dim, class_sizes, hidden_enc, hidden_dec)
    kp = prepare_params(raw, latent_dim, class_sizes)

    y = jax.random.normal(k_y, (B, 1), jnp.float32)
    c0 = jax.nn.one_hot(jax.random.randint(k_c0, (B,), 0, class_sizes[0]),
                        class_sizes[0], dtype=jnp.float32)
    c1 = jax.nn.one_hot(jax.random.randint(k_c1, (B,), 0, class_sizes[1]),
                        class_sizes[1], dtype=jnp.float32)
    cats = [c0, c1]

    # torch.randn_like equivalent, drawn outside the kernel for determinism
    eps = jax.random.normal(k_eps, (B, latent_dim), jnp.float32)

    # references
    pr_m, _, mu_m, lv_m = cvr_forward_ref_mirror(y, cats, eps, kp)
    pr_f, _, mu_f, lv_f = cvr_forward_ref_f32(y, cats, eps, raw)

    # run with the default (large) tile and with a small tile that forces a
    # multi-step pipelined grid; both must match the references
    for br in (2048, 64):
        pred_y, y_out, mu, log_var = cvr_forward(y, cats, eps, kp, block_rows=br)
        jax.block_until_ready((pred_y, mu, log_var))
        assert pred_y.shape == (B, 1) and mu.shape == (B, latent_dim) \
            and log_var.shape == (B, latent_dim)

        # tight check vs exact-structure (bf16-rounded) reference
        np.testing.assert_allclose(np.asarray(pred_y), np.asarray(pr_m),
                                   rtol=1e-4, atol=1e-4)
        np.testing.assert_allclose(np.asarray(mu), np.asarray(mu_m),
                                   rtol=1e-4, atol=1e-4)
        np.testing.assert_allclose(np.asarray(log_var), np.asarray(lv_m),
                                   rtol=1e-4, atol=1e-4)

        # loose sanity check vs PyTorch-faithful f32 reference
        np.testing.assert_allclose(np.asarray(pred_y), np.asarray(pr_f),
                                   rtol=5e-2, atol=5e-2)
        np.testing.assert_allclose(np.asarray(mu), np.asarray(mu_f),
                                   rtol=5e-2, atol=5e-2)
        np.testing.assert_allclose(np.asarray(log_var), np.asarray(lv_f),
                                   rtol=5e-2, atol=5e-2)

    print("KERNEL_OK")
</pallas_src>

<mosaic_0001>
module attributes {stable_mosaic.version = 11 : i64} {
  func.func @kernel(%arg0: i32, %arg1: memref<128x16xf32, #tpu.memory_space<vmem>>, %arg2: memref<8x128xf32, #tpu.memory_space<vmem>>, %arg3: memref<7x64xbf16, #tpu.memory_space<vmem>>, %arg4: memref<32x32xbf16, #tpu.memory_space<vmem>>, %arg5: memref<32x16xbf16, #tpu.memory_space<vmem>>, %arg6: memref<8x32xbf16, #tpu.memory_space<vmem>>, %arg7: memref<32x32xbf16, #tpu.memory_space<vmem>>, %arg8: memref<128x17xf32, #tpu.memory_space<vmem>>) attributes {dimension_semantics = [#tpu.dimension_semantics<parallel>], iteration_bounds = array<i64: 1>, scalar_prefetch = 0 : i64, scratch_operands = 0 : i64, tpu.core_type = #tpu.core_type<tc>, window_params = [{transform_indices = @transform_0, window_bounds = array<i64: 128, 16>}, {pipeline_mode = #tpu.pipeline_mode<synchronous>, transform_indices = @transform_1, window_bounds = array<i64: 8, 128>}, {pipeline_mode = #tpu.pipeline_mode<synchronous>, transform_indices = @transform_2, window_bounds = array<i64: 7, 64>}, {pipeline_mode = #tpu.pipeline_mode<synchronous>, transform_indices = @transform_3, window_bounds = array<i64: 32, 32>}, {pipeline_mode = #tpu.pipeline_mode<synchronous>, transform_indices = @transform_4, window_bounds = array<i64: 32, 16>}, {pipeline_mode = #tpu.pipeline_mode<synchronous>, transform_indices = @transform_5, window_bounds = array<i64: 8, 32>}, {pipeline_mode = #tpu.pipeline_mode<synchronous>, transform_indices = @transform_6, window_bounds = array<i64: 32, 32>}, {transform_indices = @transform_7, window_bounds = array<i64: 128, 17>}]} {
    %c0 = arith.constant 0 : index
    %c0_0 = arith.constant 0 : index
    %0 = vector.load %arg2[%c0, %c0_0] : memref<8x128xf32, #tpu.memory_space<vmem>>, vector<8x128xf32>
    %1 = vector.extract_strided_slice %0 {offsets = [0, 0], sizes = [1, 32], strides = [1, 1]} : vector<8x128xf32> to vector<1x32xf32>
    %2 = vector.extract_strided_slice %0 {offsets = [1, 0], sizes = [1, 32], strides = [1, 1]} : vector<8x128xf32> to vector<1x32xf32>
    %3 = vector.extract_strided_slice %0 {offsets = [2, 0], sizes = [1, 16], strides = [1, 1]} : vector<8x128xf32> to vector<1x16xf32>
    %4 = vector.extract_strided_slice %0 {offsets = [3, 0], sizes = [1, 32], strides = [1, 1]} : vector<8x128xf32> to vector<1x32xf32>
    %5 = vector.extract_strided_slice %0 {offsets = [4, 0], sizes = [1, 32], strides = [1, 1]} : vector<8x128xf32> to vector<1x32xf32>
    %6 = vector.extract_strided_slice %0 {offsets = [5, 0], sizes = [1, 1], strides = [1, 1]} : vector<8x128xf32> to vector<1x1xf32>
    %7 = vector.extract_strided_slice %0 {offsets = [6, 0], sizes = [1, 32], strides = [1, 1]} : vector<8x128xf32> to vector<1x32xf32>
    %8 = vector.extract_strided_slice %0 {offsets = [7, 0], sizes = [1, 32], strides = [1, 1]} : vector<8x128xf32> to vector<1x32xf32>
    %c0_1 = arith.constant 0 : index
    %c0_2 = arith.constant 0 : index
    %9 = vector.load %arg1[%c0_1, %c0_2] : memref<128x16xf32, #tpu.memory_space<vmem>>, vector<128x16xf32>
    %10 = vector.extract_strided_slice %9 {offsets = [0, 0], sizes = [128, 1], strides = [1, 1]} : vector<128x16xf32> to vector<128x1xf32>
    %11 = vector.extract_strided_slice %9 {offsets = [0, 1], sizes = [128, 7], strides = [1, 1]} : vector<128x16xf32> to vector<128x7xf32>
    %12 = vector.extract_strided_slice %9 {offsets = [0, 8], sizes = [128, 8], strides = [1, 1]} : vector<128x16xf32> to vector<128x8xf32>
    %13 = arith.truncf %11 : vector<128x7xf32> to vector<128x7xbf16>
    %c0_3 = arith.constant 0 : index
    %c0_4 = arith.constant 0 : index
    %14 = vector.load %arg3[%c0_3, %c0_4] : memref<7x64xbf16, #tpu.memory_space<vmem>>, vector<7x64xbf16>
    %cst = arith.constant dense<0.000000e+00> : vector<128x64xf32>
    %15 = tpu.matmul %13, %14, %cst {dimension_numbers = #tpu.dot_dimension_numbers<[1], [0], [0], [1], [0, 0, 1, 1], [], []>} : vector<128x7xbf16>, vector<7x64xbf16>, vector<128x64xf32> -> vector<128x64xf32>
    %16 = vector.extract_strided_slice %15 {offsets = [0, 0], sizes = [128, 32], strides = [1, 1]} : vector<128x64xf32> to vector<128x32xf32>
    %17 = vector.extract_strided_slice %15 {offsets = [0, 32], sizes = [128, 32], strides = [1, 1]} : vector<128x64xf32> to vector<128x32xf32>
    %18 = vector.broadcast %10 : vector<128x1xf32> to vector<128x32xf32>
    %19 = vector.broadcast %7 : vector<1x32xf32> to vector<128x32xf32>
    %20 = arith.mulf %18, %19 : vector<128x32xf32>
    %21 = arith.addf %20, %16 : vector<128x32xf32>
    %22 = vector.broadcast %1 : vector<1x32xf32> to vector<128x32xf32>
    %23 = arith.addf %21, %22 : vector<128x32xf32>
    %cst_5 = arith.constant 0.000000e+00 : f32
    %24 = vector.broadcast %cst_5 : f32 to vector<128x32xf32>
    %25 = arith.maximumf %23, %24 : vector<128x32xf32>
    %26 = arith.truncf %25 : vector<128x32xf32> to vector<128x32xbf16>
    %c0_6 = arith.constant 0 : index
    %c0_7 = arith.constant 0 : index
    %27 = vector.load %arg4[%c0_6, %c0_7] : memref<32x32xbf16, #tpu.memory_space<vmem>>, vector<32x32xbf16>
    %cst_8 = arith.constant dense<0.000000e+00> : vector<128x32xf32>
    %28 = tpu.matmul %26, %27, %cst_8 {dimension_numbers = #tpu.dot_dimension_numbers<[1], [0], [0], [1], [0, 0, 1, 1], [], []>} : vector<128x32xbf16>, vector<32x32xbf16>, vector<128x32xf32> -> vector<128x32xf32>
    %29 = vector.broadcast %2 : vector<1x32xf32> to vector<128x32xf32>
    %30 = arith.addf %28, %29 : vector<128x32xf32>
    %cst_9 = arith.constant 0.000000e+00 : f32
    %31 = vector.broadcast %cst_9 : f32 to vector<128x32xf32>
    %32 = arith.maximumf %30, %31 : vector<128x32xf32>
    %33 = arith.truncf %32 : vector<128x32xf32> to vector<128x32xbf16>
    %c0_10 = arith.constant 0 : index
    %c0_11 = arith.constant 0 : index
    %34 = vector.load %arg5[%c0_10, %c0_11] : memref<32x16xbf16, #tpu.memory_space<vmem>>, vector<32x16xbf16>
    %cst_12 = arith.constant dense<0.000000e+00> : vector<128x16xf32>
    %35 = tpu.matmul %33, %34, %cst_12 {dimension_numbers = #tpu.dot_dimension_numbers<[1], [0], [0], [1], [0, 0, 1, 1], [], []>} : vector<128x32xbf16>, vector<32x16xbf16>, vector<128x16xf32> -> vector<128x16xf32>
    %36 = vector.broadcast %3 : vector<1x16xf32> to vector<128x16xf32>
    %37 = arith.addf %35, %36 : vector<128x16xf32>
    %38 = vector.extract_strided_slice %37 {offsets = [0, 0], sizes = [128, 8], strides = [1, 1]} : vector<128x16xf32> to vector<128x8xf32>
    %39 = vector.extract_strided_slice %37 {offsets = [0, 8], sizes = [128, 8], strides = [1, 1]} : vector<128x16xf32> to vector<128x8xf32>
    %cst_13 = arith.constant 5.000000e-01 : f32
    %40 = vector.broadcast %cst_13 : f32 to vector<128x8xf32>
    %41 = arith.mulf %40, %39 : vector<128x8xf32>
    %42 = math.exp %41 : vector<128x8xf32>
    %43 = arith.mulf %12, %42 : vector<128x8xf32>
    %44 = arith.addf %43, %38 : vector<128x8xf32>
    %45 = arith.truncf %44 : vector<128x8xf32> to vector<128x8xbf16>
    %c0_14 = arith.constant 0 : index
    %c0_15 = arith.constant 0 : index
    %46 = vector.load %arg6[%c0_14, %c0_15] : memref<8x32xbf16, #tpu.memory_space<vmem>>, vector<8x32xbf16>
    %cst_16 = arith.constant dense<0.000000e+00> : vector<128x32xf32>
    %47 = tpu.matmul %45, %46, %cst_16 {dimension_numbers = #tpu.dot_dimension_numbers<[1], [0], [0], [1], [0, 0, 1, 1], [], []>} : vector<128x8xbf16>, vector<8x32xbf16>, vector<128x32xf32> -> vector<128x32xf32>
    %48 = arith.addf %47, %17 : vector<128x32xf32>
    %49 = vector.broadcast %4 : vector<1x32xf32> to vector<128x32xf32>
    %50 = arith.addf %48, %49 : vector<128x32xf32>
    %cst_17 = arith.constant 0.000000e+00 : f32
    %51 = vector.broadcast %cst_17 : f32 to vector<128x32xf32>
    %52 = arith.maximumf %50, %51 : vector<128x32xf32>
    %53 = arith.truncf %52 : vector<128x32xf32> to vector<128x32xbf16>
    %c0_18 = arith.constant 0 : index
    %c0_19 = arith.constant 0 : index
    %54 = vector.load %arg7[%c0_18, %c0_19] : memref<32x32xbf16, #tpu.memory_space<vmem>>, vector<32x32xbf16>
    %cst_20 = arith.constant dense<0.000000e+00> : vector<128x32xf32>
    %55 = tpu.matmul %53, %54, %cst_20 {dimension_numbers = #tpu.dot_dimension_numbers<[1], [0], [0], [1], [0, 0, 1, 1], [], []>} : vector<128x32xbf16>, vector<32x32xbf16>, vector<128x32xf32> -> vector<128x32xf32>
    %56 = vector.broadcast %5 : vector<1x32xf32> to vector<128x32xf32>
    %57 = arith.addf %55, %56 : vector<128x32xf32>
    %cst_21 = arith.constant 0.000000e+00 : f32
    %58 = vector.broadcast %cst_21 : f32 to vector<128x32xf32>
    %59 = arith.maximumf %57, %58 : vector<128x32xf32>
    %60 = vector.broadcast %8 : vector<1x32xf32> to vector<128x32xf32>
    %61 = arith.mulf %59, %60 : vector<128x32xf32>
    %cst_22 = arith.constant dense<0.000000e+00> : vector<128xf32>
    %62 = vector.multi_reduction <add>, %61, %cst_22 [1] : vector<128x32xf32> to vector<128xf32>
    %63 = vector.shape_cast %62 : vector<128xf32> to vector<128x1xf32>
    %64 = vector.broadcast %6 : vector<1x1xf32> to vector<128x1xf32>
    %65 = arith.addf %63, %64 : vector<128x1xf32>
    %cst_23 = arith.constant 0.000000e+00 : f32
    %66 = vector.broadcast %cst_23 : f32 to vector<128x1xf32>
    %67 = arith.maximumf %65, %66 : vector<128x1xf32>
    %c0_24 = arith.constant 0 : index
    %c0_25 = arith.constant 0 : index
    %68 = vector.load %arg8[%c0_24, %c0_25] : memref<128x17xf32, #tpu.memory_space<vmem>>, vector<128x16xf32>
    tpu.vector_store %arg8[%c0_24, %c0_25], %37 {strides = array<i32>} : memref<128x17xf32, #tpu.memory_space<vmem>>, vector<128x16xf32>,
    %c0_26 = arith.constant 0 : index
    %c16 = arith.constant 16 : index
    %69 = vector.load %arg8[%c0_26, %c16] : memref<128x17xf32, #tpu.memory_space<vmem>>, vector<128x1xf32>
    tpu.vector_store %arg8[%c0_26, %c16], %67 {strides = array<i32>} : memref<128x17xf32, #tpu.memory_space<vmem>>, vector<128x1xf32>,
    return
  }
  func.func @transform_0(%arg0: i32) -> (i32, i32) {
    %c0_i32 = arith.constant 0 : i32
    %c0_i32_0 = arith.constant 0 : i32
    return %arg0, %c0_i32 : i32, i32
  }
  func.func @transform_1(%arg0: i32) -> (i32, i32) {
    %c0_i32 = arith.constant 0 : i32
    %c0_i32_0 = arith.constant 0 : i32
    %c0_i32_1 = arith.constant 0 : i32
    return %c0_i32, %c0_i32_0 : i32, i32
  }
  func.func @transform_2(%arg0: i32) -> (i32, i32) {
    %c0_i32 = arith.constant 0 : i32
    %c0_i32_0 = arith.constant 0 : i32
    %c0_i32_1 = arith.constant 0 : i32
    return %c0_i32, %c0_i32_0 : i32, i32
  }
  func.func @transform_3(%arg0: i32) -> (i32, i32) {
    %c0_i32 = arith.constant 0 : i32
    %c0_i32_0 = arith.constant 0 : i32
    %c0_i32_1 = arith.constant 0 : i32
    return %c0_i32, %c0_i32_0 : i32, i32
  }
  func.func @transform_4(%arg0: i32) -> (i32, i32) {
    %c0_i32 = arith.constant 0 : i32
    %c0_i32_0 = arith.constant 0 : i32
    %c0_i32_1 = arith.constant 0 : i32
    return %c0_i32, %c0_i32_0 : i32, i32
  }
  func.func @transform_5(%arg0: i32) -> (i32, i32) {
    %c0_i32 = arith.constant 0 : i32
    %c0_i32_0 = arith.constant 0 : i32
    %c0_i32_1 = arith.constant 0 : i32
    return %c0_i32, %c0_i32_0 : i32, i32
  }
  func.func @transform_6(%arg0: i32) -> (i32, i32) {
    %c0_i32 = arith.constant 0 : i32
    %c0_i32_0 = arith.constant 0 : i32
    %c0_i32_1 = arith.constant 0 : i32
    return %c0_i32, %c0_i32_0 : i32, i32
  }
  func.func @transform_7(%arg0: i32) -> (i32, i32) {
    %c0_i32 = arith.constant 0 : i32
    %c0_i32_0 = arith.constant 0 : i32
    return %arg0, %c0_i32 : i32, i32
  }
}

</mosaic_0001>

<bundles_post_ra>
// kernel: tpu_custom_call.1
= control target key start
LH: loop header
LB: loop body
LE: loop exit
PB: predicated region body
PF: predicated region fallthrough
CT: control target
= control target key end

     0   :  { %vm102_vm0 = vcmask 1042432   ;;  %vm103_vm1 = vcmask 1043456   ;;  %v1298_v3 = vmov 65535   ;;  %s1299_s13 = smov 127   ;;  %v1300_v29 = vmov 0   ;;  %s1301_s21 = smov 8   ;;  %s2017_s0 = inlined_call_operand.vmem [shape: f32[128,16], index: 0, kind: input, shape index: {}]   ;;  %s2018_s2 = inlined_call_operand.vmem [shape: bf16[7,64], index: 2, kind: input, shape index: {}]   ;;  %s2019_s3 = inlined_call_operand.vmem [shape: bf16[32,32], index: 3, kind: input, shape index: {}]   ;;  %s2020_s1 = inlined_call_operand.vmem [shape: f32[8,128], index: 1, kind: input, shape index: {}]   ;;  %s2021_s4 = inlined_call_operand.vmem [shape: bf16[32,16], index: 4, kind: input, shape index: {}]   ;;  %s2022_s7 = inlined_call_operand.vmem [shape: f32[128,17], index: 7, kind: output, shape index: {}]   ;;  %s2023_s5 = inlined_call_operand.vmem [shape: bf16[8,32], index: 5, kind: input, shape index: {}]   ;;  %s2024_s6 = inlined_call_operand.vmem [shape: bf16[32,32], index: 6, kind: input, shape index: {}]  }
   0x1   :  { %v1348_v0 = vld [vmem:[%s2017_s0 + $0x20] sm:$0xff]  ;;  %v1353_v1 = vld [vmem:[%s2017_s0 + $0x28] sm:$0xff]  ;;  %v104_v4 = vsel %vm102_vm0, 4294967295, %v1298_v3  ;;  %v1384_v11 = vld [vmem:[%s2017_s0 + $0x10] sm:$0xff]  ;;  %1263 = vset.pattern.permute.xlu0 %v1300_v29  ;;  %1264 = vset.pattern.permute.xlu1 %v1300_v29  ;;  %vm77_vm2 = vcmask 56320   ;;  %vm329_vm3 = vcmask 261120  }
   0x2   :  { %v1358_v2 = vld [vmem:[%s2017_s0] sm:$0xff]  ;;  %v46_v5 = vpack.c.bf16 %v1353_v1, %v1348_v0  ;;  %v1365_v6 = vld [vmem:[%s2017_s0 + $0x8] sm:$0xff]  ;;  %v1389_v12 = vld [vmem:[%s2017_s0 + $0x18] sm:$0xff]  ;;  %v105_v13 = vsel %vm103_vm1, %v104_v4, 0  ;;  %1262 = vset.pattern.permute.xlu2 %v1300_v29  ;;  %vm1080_vm4 = vcmask 130048   ;;  %s1302_s24 = smov 120  }
   0x3   :  { %v1370_v7 = vld [vmem:[%s2017_s0 + $0x40] sm:$0xff]  ;;  %v1375_v8 = vld [vmem:[%s2017_s0 + $0x48] sm:$0xff]  ;;  %v44_v9 = vpack.c.bf16 %v1365_v6, %v1358_v2  ;;  %v1395_v14 = vld [vmem:[%s2017_s0 + $0x30] sm:$0xff]  ;;  %v45_v21 = vpack.c.bf16 %v1389_v12, %v1384_v11  ;;  %vm758_vm5 = vcmask 64512   ;;  %vm1161_vm6 = vcmask 138368  }
   0x4   :  { %v48_v10 = vpack.c.bf16 %v1375_v8, %v1370_v7  ;;  %65 = vrot.lane.b32.xlu1 %v46_v5, %s1299_s13  ;;  %v1400_v15 = vld [vmem:[%s2017_s0 + $0x38] sm:$0xff]  ;;  %v1405_v16 = vld [vmem:[%s2017_s0 + $0x50] sm:$0xff]  ;;  %v52_v18 = vld [vmem:[%s2018_s2] sm:$0xf] }
   0x5   :  { %61 = vrot.lane.b32.xlu0 %v44_v9, %s1299_s13  ;;  %v1410_v17 = vld [vmem:[%s2017_s0 + $0x58] sm:$0xff]  ;;  %v107_v19 = vand.u32 %v105_v13, %v52_v18  ;;  %v47_v20 = vpack.c.bf16 %v1400_v15, %v1395_v14  ;;  %v1424_v23 = vld [vmem:[%s2017_s0 + $0x70] sm:$0xff]  ;;  %v1434_v25 = vld [vmem:[%s2017_s0 + $0x60] sm:$0xff] }
   0x6   :  { %69 = vrot.lane.b32.xlu2 %v48_v10, %s1299_s13  ;;  %v49_v22 = vpack.c.bf16 %v1410_v17, %v1405_v16  ;;  %v1429_v24 = vld [vmem:[%s2017_s0 + $0x78] sm:$0xff]  ;;  %v1439_v26 = vld [vmem:[%s2017_s0 + $0x68] sm:$0xff]  ;;  %v1246_v39 = vld [vmem:[%s2019_s3] sm:$0xff] }
   0x7   :  { %1253 = vmatpush.bf16.msra.mxu2 %v107_v19  ;;  %116 = vmatpush.bf16.msra.mxu0 %v107_v19  ;;  %v51_v27 = vpack.c.bf16 %v1429_v24, %v1424_v23  ;;  %v50_v28 = vpack.c.bf16 %v1439_v26, %v1434_v25  ;;  %v1247_v38 = vld [vmem:[%s2019_s3 + $0x8] sm:$0xff]  ;;  %v1478_v40 = vld [vmem:[%s2020_s1] sm:$0xff] }
   0x8   :  { %1252 = vmatpush.bf16.msra.mxu1 %v107_v19  ;;  %1254 = vmatpush.bf16.msra.mxu3 %v107_v19  ;;  %v1481_v41 = vperm.slane %v1478_v40, 6  ;;  %v1488_v47 = vperm.slane %v1478_v40, 0 }
   0xc   :  { %67 = vrot.lane.b32.xlu1 %v47_v20, %s1299_s13  ;;  %360 = vmatpush.bf16.msrb.mxu1 %v1247_v38 }
   0xd   :  { %63 = vrot.lane.b32.xlu0 %v45_v21, %s1299_s13 }
   0xe   :  { %71 = vrot.lane.b32.xlu2 %v49_v22, %s1299_s13 }
  0x10   :  { %361 = vmatpush.bf16.msrb.mxu1 %v1246_v39 }
  0x14   :  { %75 = vrot.lane.b32.xlu1 %v51_v27, %s1299_s13 }
  0x15   :  { %73 = vrot.lane.b32.xlu0 %v50_v28, %s1299_s13 }
  0x16   :  { %160 = vperm.xlu2 %1262, %v1358_v2  }
  0x1c   :  { %170 = vperm.xlu1 %1264, %v1384_v11  }
  0x1d   :  { %165 = vperm.xlu0 %1263, %v1365_v6  }
  0x1e   :  { %175 = vperm.xlu2 %1262, %v1389_v12  }
  0x24   :  { %180 = vperm.xlu1 %1264, %v1348_v0  }
  0x25   :  { %190 = vperm.xlu0 %1263, %v1395_v14  }
  0x26   :  { %185 = vperm.xlu2 %1262, %v1353_v1  }
  0x2c   :  { %195 = vperm.xlu1 %1264, %v1400_v15  }
  0x2d   :  { %205 = vperm.xlu0 %1263, %v1375_v8  }
  0x2e   :  { %200 = vperm.xlu2 %1262, %v1370_v7  }
  0x34   :  { %210 = vperm.xlu1 %1264, %v1405_v16  }
  0x35   :  { %220 = vperm.xlu0 %1263, %v1434_v25  }
  0x36   :  { %215 = vperm.xlu2 %1262, %v1410_v17  }
  0x3c   :  { %225 = vperm.xlu1 %1264, %v1439_v26  }
  0x3d   :  { %235 = vperm.xlu0 %1263, %v1429_v24  }
  0x3e   :  { %230 = vperm.xlu2 %1262, %v1424_v23  }
  0x60   :  { %v70_v30 = vpop.permute.xlu2 %69 }
  0x61   :  { %1186 = vmatmul.msk.bf16.vlgmr.msra.gmra.mxu2 %vm77_vm2, %v70_v30 }
  0x68   :  { %v72_v31 = vpop.permute.xlu2 %71 }
  0x70   :  { %v161_v42 = vpop.permute.xlu2 %160 }
  0x71   :  { %1187 = vmatmul.msk.bf16.gmra.mxu2 %vm77_vm2, %v72_v31  ;;  %v239_v44 = vmul.f32 %v1481_v41, %v161_v42 }
  0x76   :  { %v66_v32 = vpop.permute.xlu1 %65 }
  0x77   :  { %v62_v33 = vpop.permute.xlu0 %61  ;;  %1184 = vmatmul.msk.bf16.vlgmr.msra.gmra.mxu1 %vm77_vm2, %v66_v32 }
  0x78   :  { %1182 = vmatmul.msk.bf16.vlgmr.msra.gmra.mxu0 %vm77_vm2, %v62_v33  ;;  %v176_v60 = vpop.permute.xlu2 %175 }
  0x79   :  { %v242_v62 = vmul.f32 %v1481_v41, %v176_v60 }
  0x7e   :  { %v68_v35 = vpop.permute.xlu1 %67 }
  0x7f   :  { %v64_v34 = vpop.permute.xlu0 %63 }
  0x80   :  { %v186_v18 = vpop.permute.xlu2 %185 }
  0x81   :  { %v244_v20 = vmul.f32 %v1481_v41, %v186_v18 }
  0x86   :  { %v76_v37 = vpop.permute.xlu1 %75 }
  0x87   :  { %v74_v36 = vpop.permute.xlu0 %73  ;;  %1185 = vmatmul.msk.bf16.gmra.mxu1 %vm77_vm2, %v68_v35 }
  0x88   :  { %1183 = vmatmul.msk.bf16.gmra.mxu0 %vm77_vm2, %v64_v34  ;;  %1188 = vmatmul.msk.bf16.vlgmr.msra.gmra.mxu3 %vm77_vm2, %v74_v36 }
  0x8e   :  { %v171_v56 = vpop.permute.xlu1 %170 }
  0x8f   :  { %v166_v45 = vpop.permute.xlu0 %165  ;;  %v241_v58 = vmul.f32 %v1481_v41, %v171_v56 }
  0x90   :  { %v240_v46 = vmul.f32 %v1481_v41, %v166_v45 }
  0x96   :  { %v181_v19 = vpop.permute.xlu1 %180 }
  0x97   :  { %v243_v21 = vmul.f32 %v1481_v41, %v181_v19  ;;  %v191_v38 = vpop.permute.xlu0 %190 }
  0x98   :  { %1189 = vmatmul.msk.bf16.gmra.mxu3 %vm77_vm2, %v76_v37  ;;  %v245_v42 = vmul.f32 %v1481_v41, %v191_v38 }
  0x9e   :  { %v196_v34 = vpop.permute.xlu1 %195 }
  0x9f   :  { %v246_v35 = vmul.f32 %v1481_v41, %v196_v34 }
  0xe4   :  { %v1524_v39 = vpop.f32.mrf.mxu2 }
  0xf4   :  { %v1500_v59 = vpop.f32.mrf.mxu1 }
  0xf5   :  { %v1483_v43 = vpop.f32.mrf.mxu0  ;;  %v259_v27 = vadd.f32 %v243_v21, %v1500_v59 }
  0xf6   :  { %v255_v48 = vadd.f32 %v239_v44, %v1483_v43 }
  0xf7   :  { %v276_v30 = vadd.f32 %v1488_v47, %v259_v27  ;;  %v1249_v27 = vld [vmem:[%s2021_s4 + $0x8] sm:$0xff] }
  0xf8   :  { %v272_v50 = vadd.f32 %v1488_v47, %v255_v48  ;;  %474 = vmatpush.bf16.msrb.mxu2 %v1249_v27 }
  0xf9   :  { %v292_v32 = vmax.f32 %v276_v30, 0.0 }
  0xfa   :  { %v288_v53 = vmax.f32 %v272_v50, 0.0 }
  0xfc   :  { %v1509_v9 = vpop.f32.mrf.mxu1 }
  0xfd   :  { %v1491_v49 = vpop.f32.mrf.mxu0  ;;  %v260_v28 = vadd.f32 %v244_v20, %v1509_v9 }
  0xfe   :  { %v256_v51 = vadd.f32 %v240_v46, %v1491_v49 }
  0xff   :  { %v277_v31 = vadd.f32 %v1488_v47, %v260_v28 }
 0x100   :  { %v273_v52 = vadd.f32 %v1488_v47, %v256_v51  ;;  %v1531_v51 = vpop.f32.mrf.mxu2 }
 0x101   :  { %v293_v33 = vmax.f32 %v277_v31, 0.0 }
 0x102   :  { %v289_v54 = vmax.f32 %v273_v52, 0.0 }
 0x103   :  { %v306_v36 = vpack.c.bf16 %v293_v33, %v292_v32 }
 0x104   :  { %v304_v55 = vpack.c.bf16 %v289_v54, %v288_v53  ;;  %v1516_v29 = vpop.f32.mrf.mxu1  ;;  %v201_v53 = vpop.permute.xlu2 %200 }
 0x105   :  { %v1496_v57 = vpop.f32.mrf.mxu0  ;;  %v261_v45 = vadd.f32 %v245_v42, %v1516_v29  ;;  %v206_v54 = vpop.permute.xlu0 %205 }
 0x106   :  { %1198 = vmatmul.msk.bf16.vlgmr.msrb.gmra.mxu1 %vm329_vm3, %v304_v55  ;;  %v257_v61 = vadd.f32 %v241_v58, %v1496_v57  ;;  %v247_v55 = vmul.f32 %v1481_v41, %v201_v53  ;;  %v248_v56 = vmul.f32 %v1481_v41, %v206_v54 }
 0x107   :  { %v278_v48 = vadd.f32 %v1488_v47, %v261_v45  ;;  %v1248_v45 = vld [vmem:[%s2021_s4] sm:$0xff] }
 0x108   :  { %v274_v3 = vadd.f32 %v1488_v47, %v257_v61  ;;  %v263_v60 = vadd.f32 %v247_v55, %v1524_v39  ;;  %v264_v61 = vadd.f32 %v248_v56, %v1531_v51  ;;  %475 = vmatpush.bf16.msrb.mxu2 %v1248_v45 }
 0x109   :  { %v294_v52 = vmax.f32 %v278_v48, 0.0 }
 0x10a   :  { %v290_v10 = vmax.f32 %v274_v3, 0.0  ;;  %v280_v3 = vadd.f32 %v1488_v47, %v263_v60 }
 0x10b   :  { %v1550_v28 = vpop.f32.mrf.mxu3 }
 0x10c   :  { %v1521_v37 = vpop.f32.mrf.mxu1  ;;  %v216_v18 = vpop.permute.xlu2 %215 }
 0x10d   :  { %v1504_v63 = vpop.f32.mrf.mxu0  ;;  %v262_v44 = vadd.f32 %v246_v35, %v1521_v37  ;;  %v250_v19 = vmul.f32 %v1481_v41, %v216_v18 }
 0x10e   :  { %v258_v4 = vadd.f32 %v242_v62, %v1504_v63  ;;  %v1538_v62 = vpop.f32.mrf.mxu2 }
 0x10f   :  { %v279_v46 = vadd.f32 %v1488_v47, %v262_v44 }
 0x110   :  { %v275_v5 = vadd.f32 %v1488_v47, %v258_v4  ;;  %v281_v4 = vadd.f32 %v1488_v47, %v264_v61 }
 0x111   :  { %v295_v50 = vmax.f32 %v279_v46, 0.0  ;;  %v221_v46 = vpop.permute.xlu0 %220 }
 0x112   :  { %v291_v13 = vmax.f32 %v275_v5, 0.0  ;;  %v296_v5 = vmax.f32 %v280_v3, 0.0  ;;  %v251_v48 = vmul.f32 %v1481_v41, %v221_v46 }
 0x113   :  { %v307_v58 = vpack.c.bf16 %v295_v50, %v294_v52 }
 0x114   :  { %v305_v22 = vpack.c.bf16 %v291_v13, %v290_v10  ;;  %v297_v10 = vmax.f32 %v281_v4, 0.0  ;;  %v211_v13 = vpop.permute.xlu1 %210  ;;  %v267_v52 = vadd.f32 %v251_v48, %v1550_v28  ;;  %v231_v3 = vpop.permute.xlu2 %230 }
 0x115   :  { %v249_v20 = vmul.f32 %v1481_v41, %v211_v13 }
 0x116   :  { %1199 = vmatmul.msk.bf16.gmra.mxu1 %vm329_vm3, %v305_v22  ;;  %v308_v21 = vpack.c.bf16 %v297_v10, %v296_v5  ;;  %v1544_v22 = vpop.f32.mrf.mxu2  ;;  %v284_v55 = vadd.f32 %v1488_v47, %v267_v52  ;;  %v253_v10 = vmul.f32 %v1481_v41, %v231_v3 }
 0x117   :  { %v265_v30 = vadd.f32 %v249_v20, %v1538_v62  ;;  %v266_v31 = vadd.f32 %v250_v19, %v1544_v22 }
 0x119   :  { %v282_v32 = vadd.f32 %v1488_v47, %v265_v30  ;;  %v283_v33 = vadd.f32 %v1488_v47, %v266_v31  ;;  %v236_v60 = vpop.permute.xlu0 %235 }
 0x11a   :  { %v254_v5 = vmul.f32 %v1481_v41, %v236_v60 }
 0x11b   :  { %v298_v34 = vmax.f32 %v282_v32, 0.0  ;;  %v299_v35 = vmax.f32 %v283_v33, 0.0  ;;  %v316_v32 = vperm.slane %v1478_v40, 1 }
 0x11c   :  { %v226_v38 = vpop.permute.xlu1 %225 }
 0x11d   :  { %v309_v42 = vpack.c.bf16 %v299_v35, %v298_v34  ;;  %v252_v44 = vmul.f32 %v1481_v41, %v226_v38 }
 0x126   :  { %1200 = vmatmul.msk.bf16.gmra.mxu1 %vm329_vm3, %v306_v36  ;;  %v1556_v36 = vpop.f32.mrf.mxu3 }
 0x127   :  { %v268_v50 = vadd.f32 %v252_v44, %v1556_v36 }
 0x129   :  { %v285_v54 = vadd.f32 %v1488_v47, %v268_v50 }
 0x12b   :  { %v301_v56 = vmax.f32 %v285_v54, 0.0 }
 0x12e   :  { %v1566_v53 = vpop.f32.mrf.mxu3 }
 0x12f   :  { %v269_v18 = vadd.f32 %v253_v10, %v1566_v53 }
 0x131   :  { %v286_v20 = vadd.f32 %v1488_v47, %v269_v18 }
 0x133   :  { %v302_v27 = vmax.f32 %v286_v20, 0.0 }
 0x136   :  { %1201 = vmatmul.msk.bf16.gmra.mxu1 %vm329_vm3, %v307_v58  ;;  %v300_v58 = vmax.f32 %v284_v55, 0.0  ;;  %v1570_v4 = vpop.f32.mrf.mxu3 }
 0x137   :  { %v270_v13 = vadd.f32 %v254_v5, %v1570_v4 }
 0x138   :  { %v310_v61 = vpack.c.bf16 %v301_v56, %v300_v58 }
 0x139   :  { %v287_v19 = vadd.f32 %v1488_v47, %v270_v13 }
 0x146   :  { %1202 = vmatmul.msk.bf16.gmra.mxu1 %vm329_vm3, %v308_v21  ;;  %v303_v21 = vmax.f32 %v287_v19, 0.0 }
 0x148   :  { %v311_v30 = vpack.c.bf16 %v303_v21, %v302_v27 }
 0x156   :  { %1203 = vmatmul.msk.bf16.gmra.mxu1 %vm329_vm3, %v309_v42 }
 0x166   :  { %1204 = vmatmul.msk.bf16.gmra.mxu1 %vm329_vm3, %v310_v61 }
 0x176   :  { %1205 = vmatmul.msk.bf16.gmra.mxu1 %vm329_vm3, %v311_v30 }
 0x183   :  { %v363_v31 = vpop.f32.mrf.mxu1 }
 0x184   :  { %v364_v33 = vadd.f32 %v363_v31, %v316_v32 }
 0x186   :  { %v403_v41 = vmax.f32 %v364_v33, 0.0 }
 0x18b   :  { %v365_v34 = vpop.f32.mrf.mxu1 }
 0x18c   :  { %v366_v35 = vadd.f32 %v365_v34, %v316_v32 }
 0x18e   :  { %v404_v38 = vmax.f32 %v366_v35, 0.0 }
 0x190   :  { %v419_v42 = vpack.c.bf16 %v404_v38, %v403_v41 }
 0x192   :  { %1214 = vmatmul.msk.bf16.vlgmr.msrb.gmra.mxu2 %vm329_vm3, %v419_v42 }
 0x193   :  { %v368_v44 = vpop.f32.mrf.mxu1 }
 0x194   :  { %v369_v45 = vadd.f32 %v368_v44, %v316_v32 }
 0x196   :  { %v405_v48 = vmax.f32 %v369_v45, 0.0 }
 0x19b   :  { %v370_v46 = vpop.f32.mrf.mxu1 }
 0x19c   :  { %v371_v47 = vadd.f32 %v370_v46, %v316_v32 }
 0x19e   :  { %v406_v50 = vmax.f32 %v371_v47, 0.0 }
 0x1a0   :  { %v420_v52 = vpack.c.bf16 %v406_v50, %v405_v48 }
 0x1a2   :  { %1215 = vmatmul.msk.bf16.gmra.mxu2 %vm329_vm3, %v420_v52 }
 0x1a3   :  { %v373_v54 = vpop.f32.mrf.mxu1 }
 0x1a4   :  { %v374_v55 = vadd.f32 %v373_v54, %v316_v32 }
 0x1a6   :  { %v407_v60 = vmax.f32 %v374_v55, 0.0 }
 0x1ab   :  { %v375_v56 = vpop.f32.mrf.mxu1 }
 0x1ac   :  { %v376_v58 = vadd.f32 %v375_v56, %v316_v32 }
 0x1ae   :  { %v408_v61 = vmax.f32 %v376_v58, 0.0 }
 0x1b0   :  { %v421_v3 = vpack.c.bf16 %v408_v61, %v407_v60 }
 0x1b2   :  { %1216 = vmatmul.msk.bf16.gmra.mxu2 %vm329_vm3, %v421_v3 }
 0x1b3   :  { %v378_v5 = vpop.f32.mrf.mxu1 }
 0x1b4   :  { %v379_v10 = vadd.f32 %v378_v5, %v316_v32 }
 0x1b6   :  { %v409_v19 = vmax.f32 %v379_v10, 0.0 }
 0x1bb   :  { %v380_v13 = vpop.f32.mrf.mxu1 }
 0x1bc   :  { %v381_v18 = vadd.f32 %v380_v13, %v316_v32 }
 0x1be   :  { %v410_v20 = vmax.f32 %v381_v18, 0.0 }
 0x1c0   :  { %v422_v21 = vpack.c.bf16 %v410_v20, %v409_v19  ;;  %v1590_v20 = vperm.slane %v1478_v40, 2 }
 0x1c2   :  { %1217 = vmatmul.msk.bf16.gmra.mxu2 %vm329_vm3, %v422_v21 }
 0x1c3   :  { %v383_v27 = vpop.f32.mrf.mxu1 }
 0x1c4   :  { %v384_v30 = vadd.f32 %v383_v27, %v316_v32 }
 0x1c6   :  { %v411_v34 = vmax.f32 %v384_v30, 0.0 }
 0x1cb   :  { %v385_v31 = vpop.f32.mrf.mxu1 }
 0x1cc   :  { %v386_v33 = vadd.f32 %v385_v31, %v316_v32 }
 0x1ce   :  { %v412_v35 = vmax.f32 %v386_v33, 0.0 }
 0x1d0   :  { %v423_v41 = vpack.c.bf16 %v412_v35, %v411_v34 }
 0x1d2   :  { %1218 = vmatmul.msk.bf16.gmra.mxu2 %vm329_vm3, %v423_v41 }
 0x1d3   :  { %v388_v38 = vpop.f32.mrf.mxu1 }
 0x1d4   :  { %v389_v42 = vadd.f32 %v388_v38, %v316_v32 }
 0x1d6   :  { %v413_v46 = vmax.f32 %v389_v42, 0.0 }
 0x1db   :  { %v390_v44 = vpop.f32.mrf.mxu1 }
 0x1dc   :  { %v391_v45 = vadd.f32 %v390_v44, %v316_v32 }
 0x1de   :  { %v414_v47 = vmax.f32 %v391_v45, 0.0 }
 0x1e0   :  { %v424_v48 = vpack.c.bf16 %v414_v47, %v413_v46 }
 0x1e2   :  { %1219 = vmatmul.msk.bf16.gmra.mxu2 %vm329_vm3, %v424_v48 }
 0x1e3   :  { %v393_v50 = vpop.f32.mrf.mxu1 }
 0x1e4   :  { %v394_v52 = vadd.f32 %v393_v50, %v316_v32 }
 0x1e6   :  { %v415_v56 = vmax.f32 %v394_v52, 0.0 }
 0x1eb   :  { %v395_v54 = vpop.f32.mrf.mxu1 }
 0x1ec   :  { %v396_v55 = vadd.f32 %v395_v54, %v316_v32 }
 0x1ee   :  { %v416_v58 = vmax.f32 %v396_v55, 0.0 }
 0x1f0   :  { %v425_v60 = vpack.c.bf16 %v416_v58, %v415_v56 }
 0x1f2   :  { %1220 = vmatmul.msk.bf16.gmra.mxu2 %vm329_vm3, %v425_v60 }
 0x1f3   :  { %v398_v61 = vpop.f32.mrf.mxu1 }
 0x1f4   :  { %v399_v3 = vadd.f32 %v398_v61, %v316_v32 }
 0x1f6   :  { %v417_v13 = vmax.f32 %v399_v3, 0.0 }
 0x1fb   :  { %v400_v5 = vpop.f32.mrf.mxu1 }
 0x1fc   :  { %v401_v10 = vadd.f32 %v400_v5, %v316_v32 }
 0x1fe   :  { %v418_v18 = vmax.f32 %v401_v10, 0.0 }
 0x200   :  { %v426_v19 = vpack.c.bf16 %v418_v18, %v417_v13 }
 0x202   :  { %1221 = vmatmul.msk.bf16.gmra.mxu2 %vm329_vm3, %v426_v19 }
 0x215   :  { %v477_v21 = vpop.f32.mrf.mxu2 }
 0x216   :  { %v478_v27 = vadd.f32 %v477_v21, %v1590_v20 }
 0x218   :  { %1081 = vst.msk [vmem:[%s2022_s7] sm:$0xff] %vm1080_vm4, %v478_v27  ;;  %597 = vrot.lane.b32.xlu1 %v478_v27, %s1301_s21  ;;  %v517_v10 = vmul.f32 0.5, %v478_v27 }
 0x21a   :  { %v533_v18 = vmul.f32 1.442695, %v517_v10 }
 0x21c   :  { %1265 = vpow2.f32 %v533_v18 }
 0x21d   :  { %v479_v32 = vpop.f32.mrf.mxu2 }
 0x21e   :  { %v480_v30 = vadd.f32 %v479_v32, %v1590_v20 }
 0x220   :  { %1082 = vst.msk [vmem:[%s2022_s7 + $0x8] sm:$0xff] %vm1080_vm4, %v480_v30  ;;  %599 = vrot.lane.b32.xlu2 %v480_v30, %s1301_s21  ;;  %v518_v13 = vmul.f32 0.5, %v480_v30 }
 0x222   :  { %v535_v19 = vmul.f32 1.442695, %v518_v13  ;;  %v1266_v27 = vpop.eup %1265 }
 0x224   :  { %1267 = vpow2.f32 %v535_v19 }
 0x225   :  { %v482_v31 = vpop.f32.mrf.mxu2 }
 0x226   :  { %v1605_v33 = vadd.f32 %v482_v31, %v1590_v20 }
 0x228   :  { %1083 = vst.msk [vmem:[%s2022_s7 + $0x10] sm:$0xff] %vm1080_vm4, %v1605_v33  ;;  %601 = vrot.lane.b32.xlu0 %v1605_v33, %s1301_s21  ;;  %v519_v10 = vmul.f32 0.5, %v1605_v33 }
 0x22a   :  { %v1268_v31 = vpop.eup %1267 }
 0x22d   :  { %v484_v34 = vpop.f32.mrf.mxu2 }
 0x22e   :  { %v1615_v35 = vadd.f32 %v484_v34, %v1590_v20 }
 0x230   :  { %1084 = vst.msk [vmem:[%s2022_s7 + $0x18] sm:$0xff] %vm1080_vm4, %v1615_v35  ;;  %603 = vrot.lane.b32.xlu1 %v1615_v35, %s1301_s21  ;;  %v520_v13 = vmul.f32 0.5, %v1615_v35 }
 0x235   :  { %v487_v41 = vpop.f32.mrf.mxu2 }
 0x236   :  { %v1625_v38 = vadd.f32 %v487_v41, %v1590_v20 }
 0x238   :  { %1085 = vst.msk [vmem:[%s2022_s7 + $0x20] sm:$0xff] %vm1080_vm4, %v1625_v38  ;;  %605 = vrot.lane.b32.xlu2 %v1625_v38, %s1301_s21  ;;  %v521_v18 = vmul.f32 0.5, %v1625_v38 }
 0x23d   :  { %v489_v42 = vpop.f32.mrf.mxu2 }
 0x23e   :  { %v1635_v44 = vadd.f32 %v489_v42, %v1590_v20  ;;  %v566_v42 = vmul.f32 %v1268_v31, %v1365_v6  ;;  %v539_v6 = vmul.f32 1.442695, %v520_v13  ;;  %v541_v31 = vmul.f32 1.442695, %v521_v18 }
 0x240   :  { %1086 = vst.msk [vmem:[%s2022_s7 + $0x28] sm:$0xff] %vm1080_vm4, %v1635_v44  ;;  %607 = vrot.lane.b32.xlu0 %v1635_v44, %s1301_s21  ;;  %v522_v19 = vmul.f32 0.5, %v1635_v44 }
 0x245   :  { %v492_v45 = vpop.f32.mrf.mxu2 }
 0x246   :  { %v1645_v46 = vadd.f32 %v492_v45, %v1590_v20  ;;  %v565_v45 = vmul.f32 %v1266_v27, %v1358_v2  ;;  %v537_v2 = vmul.f32 1.442695, %v519_v10 }
 0x248   :  { %1087 = vst.msk [vmem:[%s2022_s7 + $0x30] sm:$0xff] %vm1080_vm4, %v1645_v46  ;;  %609 = vrot.lane.b32.xlu2 %v1645_v46, %s1301_s21  ;;  %1269 = vpow2.f32 %v537_v2  ;;  %v523_v38 = vmul.f32 0.5, %v1645_v46 }
 0x249   :  { %1271 = vpow2.f32 %v539_v6 }
 0x24a   :  { %1273 = vpow2.f32 %v541_v31  ;;  %v545_v10 = vmul.f32 1.442695, %v523_v38 }
 0x24d   :  { %v494_v47 = vpop.f32.mrf.mxu2 }
 0x24e   :  { %v1655_v48 = vadd.f32 %v494_v47, %v1590_v20 }
 0x250   :  { %1088 = vst.msk [vmem:[%s2022_s7 + $0x38] sm:$0xff] %vm1080_vm4, %v1655_v48  ;;  %611 = vrot.lane.b32.xlu0 %v1655_v48, %s1301_s21  ;;  %v524_v44 = vmul.f32 0.5, %v1655_v48 }
 0x252   :  { %v547_v6 = vmul.f32 1.442695, %v524_v44 }
 0x255   :  { %v497_v50 = vpop.f32.mrf.mxu2 }
 0x256   :  { %v1665_v52 = vadd.f32 %v497_v50, %v1590_v20 }
 0x258   :  { %1089 = vst.msk [vmem:[%s2022_s7 + $0x40] sm:$0xff] %vm1080_vm4, %v1665_v52  ;;  %613 = vrot.lane.b32.xlu2 %v1665_v52, %s1301_s21  ;;  %v525_v46 = vmul.f32 0.5, %v1665_v52  ;;  %v669_v52 = vld [vmem:[%s2023_s5] sm:$0xf]  ;;  %s1303_s5 = smov 96  }
 0x25d   :  { %v499_v54 = vpop.f32.mrf.mxu2 }
 0x25e   :  { %v1675_v55 = vadd.f32 %v499_v54, %v1590_v20 }
 0x260   :  { %1090 = vst.msk [vmem:[%s2022_s7 + $0x48] sm:$0xff] %vm1080_vm4, %v1675_v55  ;;  %615 = vrot.lane.b32.xlu0 %v1675_v55, %s1301_s21  ;;  %v526_v48 = vmul.f32 0.5, %v1675_v55  ;;  %v784_v55 = vsel %vm103_vm1, %v669_v52, 0 }
 0x261   :  { %793 = vmatpush.bf16.msrb.mxu3 %v784_v55 }
 0x262   :  { %v551_v31 = vmul.f32 1.442695, %v526_v48 }
 0x265   :  { %v502_v56 = vpop.f32.mrf.mxu2 }
 0x266   :  { %v1685_v58 = vadd.f32 %v502_v56, %v1590_v20 }
 0x268   :  { %1091 = vst.msk [vmem:[%s2022_s7 + $0x50] sm:$0xff] %vm1080_vm4, %v1685_v58  ;;  %617 = vrot.lane.b32.xlu2 %v1685_v58, %s1301_s21 }
 0x26d   :  { %v504_v60 = vpop.f32.mrf.mxu2 }
 0x26e   :  { %v1695_v61 = vadd.f32 %v504_v60, %v1590_v20 }
 0x270   :  { %1092 = vst.msk [vmem:[%s2022_s7 + $0x58] sm:$0xff] %vm1080_vm4, %v1695_v61  ;;  %619 = vrot.lane.b32.xlu0 %v1695_v61, %s1301_s21 }
 0x275   :  { %v507_v3 = vpop.f32.mrf.mxu2 }
 0x276   :  { %v1705_v5 = vadd.f32 %v507_v3, %v1590_v20 }
 0x278   :  { %1093 = vst.msk [vmem:[%s2022_s7 + $0x60] sm:$0xff] %vm1080_vm4, %v1705_v5  ;;  %621 = vrot.lane.b32.xlu2 %v1705_v5, %s1301_s21 }
 0x27a   :  { %v600_v41 = vpop.permute.xlu2 %599 }
 0x27b   :  { %v646_v50 = vadd.f32 %v600_v41, %v566_v42 }
 0x27d   :  { %v509_v21 = vpop.f32.mrf.mxu2 }
 0x27e   :  { %v1715_v32 = vadd.f32 %v509_v21, %v1590_v20 }
 0x280   :  { %1094 = vst.msk [vmem:[%s2022_s7 + $0x68] sm:$0xff] %vm1080_vm4, %v1715_v32  ;;  %623 = vrot.lane.b32.xlu0 %v1715_v32, %s1301_s21 }
 0x285   :  { %v512_v30 = vpop.f32.mrf.mxu2 }
 0x286   :  { %v1725_v34 = vadd.f32 %v512_v30, %v1590_v20 }
 0x288   :  { %1095 = vst.msk [vmem:[%s2022_s7 + $0x70] sm:$0xff] %vm1080_vm4, %v1725_v34  ;;  %625 = vrot.lane.b32.xlu2 %v1725_v34, %s1301_s21 }
 0x28a   :  { %v598_v47 = vpop.permute.xlu1 %597 }
 0x28b   :  { %v645_v54 = vadd.f32 %v598_v47, %v565_v45  ;;  %v543_v45 = vmul.f32 1.442695, %v522_v19 }
 0x28d   :  { %v661_v56 = vpack.c.bf16 %v646_v50, %v645_v54  ;;  %v514_v60 = vpop.f32.mrf.mxu2  ;;  %1275 = vpow2.f32 %v543_v45  ;;  %v528_v45 = vmul.f32 0.5, %v1695_v61  ;;  %v530_v61 = vmul.f32 0.5, %v1715_v32 }
 0x28e   :  { %v1737_v3 = vadd.f32 %v514_v60, %v1590_v20  ;;  %v1270_v20 = vpop.eup %1269  ;;  %1277 = vpow2.f32 %v545_v10 }
 0x28f   :  { %678 = vrot.lane.b32.xlu1 %v661_v56, %s1302_s24  ;;  %v1272_v33 = vpop.eup %1271  ;;  %v567_v21 = vmul.f32 %v1270_v20, %v1384_v11  ;;  %1279 = vpow2.f32 %v547_v6 }
 0x290   :  { %1096 = vst.msk [vmem:[%s2022_s7 + $0x78] sm:$0xff] %vm1080_vm4, %v1737_v3  ;;  %627 = vrot.lane.b32.xlu0 %v1737_v3, %s1301_s21  ;;  %v568_v27 = vmul.f32 %v1272_v33, %v1389_v12  ;;  %v1274_v50 = vpop.eup %1273 }
 0x291   :  { %v569_v11 = vmul.f32 %v1274_v50, %v1348_v0 }
 0x292   :  { %v606_v56 = vpop.permute.xlu2 %605 }
 0x293   :  { %v1276_v54 = vpop.eup %1275  ;;  %v649_v13 = vadd.f32 %v606_v56, %v569_v11 }
 0x294   :  { %v570_v12 = vmul.f32 %v1276_v54, %v1353_v1  ;;  %v1278_v33 = vpop.eup %1277 }
 0x295   :  { %v1280_v18 = vpop.eup %1279  ;;  %v571_v0 = vmul.f32 %v1278_v33, %v1395_v14 }
 0x296   :  { %v572_v1 = vmul.f32 %v1280_v18, %v1400_v15  ;;  %v527_v15 = vmul.f32 0.5, %v1685_v58  ;;  %v529_v58 = vmul.f32 0.5, %v1705_v5  ;;  %v531_v5 = vmul.f32 0.5, %v1725_v34 }
 0x298   :  { %v553_v44 = vmul.f32 1.442695, %v527_v15 }
 0x29a   :  { %v602_v35 = vpop.permute.xlu0 %601 }
 0x29b   :  { %v647_v41 = vadd.f32 %v602_v35, %v567_v21  ;;  %v549_v21 = vmul.f32 1.442695, %v525_v46  ;;  %v559_v46 = vmul.f32 1.442695, %v530_v61 }
 0x29d   :  { %1281 = vpow2.f32 %v549_v21  ;;  %v561_v21 = vmul.f32 1.442695, %v531_v5 }
 0x29e   :  { %1283 = vpow2.f32 %v551_v31 }
 0x29f   :  { %1285 = vpow2.f32 %v553_v44 }
 0x2a2   :  { %v604_v30 = vpop.permute.xlu1 %603  ;;  %v610_v19 = vpop.permute.xlu2 %609 }
 0x2a3   :  { %v648_v42 = vadd.f32 %v604_v30, %v568_v27  ;;  %v651_v27 = vadd.f32 %v610_v19, %v571_v0  ;;  %v1282_v14 = vpop.eup %1281 }
 0x2a4   :  { %v573_v50 = vmul.f32 %v1282_v14, %v1370_v7 }
 0x2a5   :  { %v662_v47 = vpack.c.bf16 %v648_v42, %v647_v41  ;;  %v1284_v42 = vpop.eup %1283 }
 0x2a6   :  { %v574_v54 = vmul.f32 %v1284_v42, %v1375_v8  ;;  %v1286_v10 = vpop.eup %1285 }
 0x2a7   :  { %680 = vrot.lane.b32.xlu1 %v662_v47, %s1302_s24  ;;  %v575_v7 = vmul.f32 %v1286_v10, %v1405_v16  ;;  %v532_v16 = vmul.f32 0.5, %v1737_v3 }
 0x2a9   :  { %v563_v31 = vmul.f32 1.442695, %v532_v16 }
 0x2b2   :  { %v608_v60 = vpop.permute.xlu0 %607  ;;  %v614_v47 = vpop.permute.xlu2 %613 }
 0x2b3   :  { %v650_v2 = vadd.f32 %v608_v60, %v570_v12  ;;  %v653_v56 = vadd.f32 %v614_v47, %v573_v50  ;;  %v555_v12 = vmul.f32 1.442695, %v528_v45 }
 0x2b5   :  { %v663_v20 = vpack.c.bf16 %v650_v2, %v649_v13  ;;  %1287 = vpow2.f32 %v555_v12 }
 0x2b7   :  { %682 = vrot.lane.b32.xlu1 %v663_v20, %s1302_s24  ;;  %v557_v20 = vmul.f32 1.442695, %v529_v58 }
 0x2b9   :  { %1289 = vpow2.f32 %v557_v20 }
 0x2ba   :  { %1291 = vpow2.f32 %v559_v46 }
 0x2bb   :  { %v1288_v13 = vpop.eup %1287  ;;  %1293 = vpow2.f32 %v561_v21 }
 0x2bc   :  { %v576_v8 = vmul.f32 %v1288_v13, %v1410_v17  ;;  %1295 = vpow2.f32 %v563_v31 }
 0x2bf   :  { %v1290_v19 = vpop.eup %1289 }
 0x2c0   :  { %v1292_v0 = vpop.eup %1291  ;;  %v577_v32 = vmul.f32 %v1290_v19, %v1434_v25 }
 0x2c2   :  { %v612_v35 = vpop.permute.xlu0 %611  ;;  %v618_v2 = vpop.permute.xlu2 %617 }
 0x2c3   :  { %v652_v30 = vadd.f32 %v612_v35, %v572_v1  ;;  %v655_v33 = vadd.f32 %v618_v2, %v575_v7  ;;  %v578_v1 = vmul.f32 %v1292_v0, %v1439_v26 }
 0x2c5   :  { %v664_v41 = vpack.c.bf16 %v652_v30, %v651_v27 }
 0x2c7   :  { %684 = vrot.lane.b32.xlu1 %v664_v41, %s1302_s24 }
 0x2d2   :  { %v616_v38 = vpop.permute.xlu0 %615  ;;  %v622_v17 = vpop.permute.xlu2 %621 }
 0x2d3   :  { %v654_v11 = vadd.f32 %v616_v38, %v574_v54  ;;  %v657_v27 = vadd.f32 %v622_v17, %v577_v32 }
 0x2d5   :  { %v665_v60 = vpack.c.bf16 %v654_v11, %v653_v56 }
 0x2d7   :  { %686 = vrot.lane.b32.xlu1 %v665_v60, %s1302_s24 }
 0x2e2   :  { %v620_v6 = vpop.permute.xlu0 %619  ;;  %v626_v25 = vpop.permute.xlu2 %625 }
 0x2e3   :  { %v656_v18 = vadd.f32 %v620_v6, %v576_v8 }
 0x2e5   :  { %v666_v48 = vpack.c.bf16 %v656_v18, %v655_v33 }
 0x2e7   :  { %688 = vrot.lane.b32.xlu1 %v666_v48, %s1302_s24 }
 0x2ef   :  { %710 = vrot.lane.b32.xlu1 %v1483_v43, %s1303_s5  ;;  %v1294_v43 = vpop.eup %1293 }
 0x2f0   :  { %v1296_v34 = vpop.eup %1295  ;;  %v579_v26 = vmul.f32 %v1294_v43, %v1424_v23 }
 0x2f1   :  { %v580_v52 = vmul.f32 %v1296_v34, %v1429_v24 }
 0x2f2   :  { %v624_v35 = vpop.permute.xlu0 %623  ;;  %v659_v55 = vadd.f32 %v626_v25, %v579_v26 }
 0x2f3   :  { %v658_v30 = vadd.f32 %v624_v35, %v578_v1 }
 0x2f5   :  { %v667_v41 = vpack.c.bf16 %v658_v30, %v657_v27 }
 0x2f7   :  { %716 = vrot.lane.b32.xlu1 %v1504_v63, %s1303_s5  ;;  %690 = vrot.lane.b32.xlu2 %v667_v41, %s1302_s24 }
 0x2ff   :  { %722 = vrot.lane.b32.xlu1 %v1516_v29, %s1303_s5  ;;  %712 = vrot.lane.b32.xlu2 %v1491_v49, %s1303_s5 }
 0x301   :  { %v679_v3 = vpop.permute.xlu1 %678 }
 0x302   :  { %1222 = vmatmul.msk.bf16.vlgmr.msrb.gmra.mxu3 %vm758_vm5, %v679_v3  ;;  %v628_v63 = vpop.permute.xlu0 %627 }
 0x303   :  { %v660_v14 = vadd.f32 %v628_v63, %v580_v52 }
 0x305   :  { %v668_v42 = vpack.c.bf16 %v660_v14, %v659_v55 }
 0x307   :  { %728 = vrot.lane.b32.xlu1 %v1531_v51, %s1303_s5  ;;  %718 = vrot.lane.b32.xlu2 %v1500_v59, %s1303_s5 }
 0x308   :  { %692 = vrot.lane.b32.xlu0 %v668_v42, %s1302_s24 }
 0x30f   :  { %734 = vrot.lane.b32.xlu1 %v1550_v28, %s1303_s5  ;;  %724 = vrot.lane.b32.xlu2 %v1521_v37, %s1303_s5  ;;  %v1250_v37 = vld [vmem:[%s2024_s6] sm:$0xff]  ;;  %v1833_v28 = vperm.slane %v1478_v40, 3 }
 0x310   :  { %714 = vrot.lane.b32.xlu0 %v1496_v57, %s1303_s5 }
 0x317   :  { %740 = vrot.lane.b32.xlu1 %v1570_v4, %s1303_s5  ;;  %730 = vrot.lane.b32.xlu2 %v1538_v62, %s1303_s5 }
 0x318   :  { %720 = vrot.lane.b32.xlu0 %v1509_v9, %s1303_s5  ;;  %v1251_v9 = vld [vmem:[%s2024_s6 + $0x8] sm:$0xff] }
 0x319   :  { %v681_v23 = vpop.permute.xlu1 %680  ;;  %923 = vmatpush.bf16.msrb.mxu0 %v1251_v9 }
 0x31a   :  { %1223 = vmatmul.msk.bf16.gmra.mxu3 %vm758_vm5, %v681_v23 }
 0x31d   :  { %924 = vmatpush.bf16.msrb.mxu0 %v1250_v37 }
 0x31f   :  { %736 = vrot.lane.b32.xlu2 %v1556_v36, %s1303_s5 }
 0x320   :  { %726 = vrot.lane.b32.xlu0 %v1524_v39, %s1303_s5 }
 0x328   :  { %732 = vrot.lane.b32.xlu0 %v1544_v22, %s1303_s5 }
 0x329   :  { %v683_v24 = vpop.permute.xlu1 %682 }
 0x32a   :  { %1224 = vmatmul.msk.bf16.gmra.mxu3 %vm758_vm5, %v683_v24 }
 0x330   :  { %738 = vrot.lane.b32.xlu0 %v1566_v53, %s1303_s5 }
 0x339   :  { %v685_v49 = vpop.permute.xlu1 %684 }
 0x33a   :  { %1225 = vmatmul.msk.bf16.gmra.mxu3 %vm758_vm5, %v685_v49 }
 0x349   :  { %v687_v57 = vpop.permute.xlu1 %686 }
 0x34a   :  { %1226 = vmatmul.msk.bf16.gmra.mxu3 %vm758_vm5, %v687_v57 }
 0x351   :  { %v691_v29 = vpop.permute.xlu2 %690 }
 0x359   :  { %v689_v59 = vpop.permute.xlu1 %688  ;;  %v713_v36 = vpop.permute.xlu2 %712 }
 0x35a   :  { %1227 = vmatmul.msk.bf16.gmra.mxu3 %vm758_vm5, %v689_v59 }
 0x361   :  { %v711_v62 = vpop.permute.xlu1 %710  ;;  %v719_v7 = vpop.permute.xlu2 %718 }
 0x369   :  { %v717_v11 = vpop.permute.xlu1 %716  ;;  %v725_v32 = vpop.permute.xlu2 %724 }
 0x36a   :  { %1228 = vmatmul.msk.bf16.gmra.mxu3 %vm758_vm5, %v691_v29 }
 0x371   :  { %v723_v16 = vpop.permute.xlu1 %722  ;;  %v731_v49 = vpop.permute.xlu2 %730 }
 0x379   :  { %v729_v26 = vpop.permute.xlu1 %728 }
 0x37a   :  { %v693_v39 = vpop.permute.xlu0 %692 }
 0x37b   :  { %1229 = vmatmul.msk.bf16.gmra.mxu3 %vm758_vm5, %v693_v39 }
 0x382   :  { %v715_v44 = vpop.permute.xlu0 %714 }
 0x385   :  { %v795_v51 = vpop.f32.mrf.mxu3 }
 0x386   :  { %v796_v22 = vadd.f32 %v795_v51, %v711_v62 }
 0x388   :  { %v836_v4 = vadd.f32 %v1833_v28, %v796_v22 }
 0x38a   :  { %v852_v47 = vmax.f32 %v836_v4, 0.0  ;;  %v721_v6 = vpop.permute.xlu0 %720 }
 0x38d   :  { %v797_v53 = vpop.f32.mrf.mxu3 }
 0x38e   :  { %v798_v15 = vadd.f32 %v797_v53, %v713_v36  ;;  %v735_v53 = vpop.permute.xlu1 %734 }
 0x390   :  { %v837_v45 = vadd.f32 %v1833_v28, %v798_v15  ;;  %v737_v15 = vpop.permute.xlu2 %736 }
 0x392   :  { %v853_v50 = vmax.f32 %v837_v45, 0.0  ;;  %v727_v34 = vpop.permute.xlu0 %726 }
 0x394   :  { %v868_v54 = vpack.c.bf16 %v853_v50, %v852_v47 }
 0x396   :  { %1238 = vmatmul.msk.bf16.vlgmr.msrb.gmra.mxu0 %vm329_vm3, %v868_v54 }
 0x39a   :  { %v733_v59 = vpop.permute.xlu0 %732 }
 0x39d   :  { %v800_v38 = vpop.f32.mrf.mxu3 }
 0x39e   :  { %v801_v56 = vadd.f32 %v800_v38, %v715_v44 }
 0x3a0   :  { %v838_v40 = vadd.f32 %v1833_v28, %v801_v56 }
 0x3a2   :  { %v854_v13 = vmax.f32 %v838_v40, 0.0 }
 0x3a5   :  { %v802_v12 = vpop.f32.mrf.mxu3 }
 0x3a6   :  { %v803_v60 = vadd.f32 %v802_v12, %v717_v11  ;;  %v739_v12 = vpop.permute.xlu0 %738 }
 0x3a8   :  { %v839_v10 = vadd.f32 %v1833_v28, %v803_v60  ;;  %v741_v60 = vpop.permute.xlu1 %740 }
 0x3aa   :  { %v855_v58 = vmax.f32 %v839_v10, 0.0 }
 0x3ac   :  { %v869_v61 = vpack.c.bf16 %v855_v58, %v854_v13 }
 0x3ad   :  { %v805_v2 = vpop.f32.mrf.mxu3 }
 0x3ae   :  { %1239 = vmatmul.msk.bf16.gmra.mxu0 %vm329_vm3, %v869_v61  ;;  %v806_v8 = vadd.f32 %v805_v2, %v719_v7 }
 0x3b0   :  { %v840_v33 = vadd.f32 %v1833_v28, %v806_v8 }
 0x3b2   :  { %v856_v48 = vmax.f32 %v840_v33, 0.0 }
 0x3b5   :  { %v807_v20 = vpop.f32.mrf.mxu3 }
 0x3b6   :  { %v808_v18 = vadd.f32 %v807_v20, %v721_v6  ;;  %v1862_v6 = vld [vmem:[%s2020_s1] sm:$0xff]  ;;  %s1304_s1 = smov 16  }
 0x3b7   :  { %v1865_v20 = vperm.slane %v1862_v6, 4 }
 0x3b8   :  { %v841_v46 = vadd.f32 %v1833_v28, %v808_v18 }
 0x3ba   :  { %v857_v19 = vmax.f32 %v841_v46, 0.0  ;;  %v1869_v46 = vperm.slane %v1862_v6, 7 }
 0x3bc   :  { %v870_v0 = vpack.c.bf16 %v857_v19, %v856_v48 }
 0x3bd   :  { %v810_v5 = vpop.f32.mrf.mxu3 }
 0x3be   :  { %1240 = vmatmul.msk.bf16.gmra.mxu0 %vm329_vm3, %v870_v0  ;;  %v811_v17 = vadd.f32 %v810_v5, %v723_v16 }
 0x3c0   :  { %v842_v35 = vadd.f32 %v1833_v28, %v811_v17 }
 0x3c2   :  { %v858_v30 = vmax.f32 %v842_v35, 0.0 }
 0x3c5   :  { %v812_v1 = vpop.f32.mrf.mxu3 }
 0x3c6   :  { %v813_v21 = vadd.f32 %v812_v1, %v725_v32 }
 0x3c8   :  { %v843_v27 = vadd.f32 %v1833_v28, %v813_v21 }
 0x3ca   :  { %v859_v31 = vmax.f32 %v843_v27, 0.0 }
 0x3cc   :  { %v871_v41 = vpack.c.bf16 %v859_v31, %v858_v30 }
 0x3cd   :  { %v815_v43 = vpop.f32.mrf.mxu3 }
 0x3ce   :  { %1241 = vmatmul.msk.bf16.gmra.mxu0 %vm329_vm3, %v871_v41  ;;  %v816_v25 = vadd.f32 %v815_v43, %v727_v34 }
 0x3d0   :  { %v844_v52 = vadd.f32 %v1833_v28, %v816_v25 }
 0x3d2   :  { %v860_v14 = vmax.f32 %v844_v52, 0.0 }
 0x3d5   :  { %v817_v3 = vpop.f32.mrf.mxu3 }
 0x3d6   :  { %v818_v63 = vadd.f32 %v817_v3, %v729_v26 }
 0x3d8   :  { %v845_v55 = vadd.f32 %v1833_v28, %v818_v63 }
 0x3da   :  { %v861_v42 = vmax.f32 %v845_v55, 0.0 }
 0x3dc   :  { %v872_v23 = vpack.c.bf16 %v861_v42, %v860_v14 }
 0x3dd   :  { %v820_v24 = vpop.f32.mrf.mxu3 }
 0x3de   :  { %1242 = vmatmul.msk.bf16.gmra.mxu0 %vm329_vm3, %v872_v23  ;;  %v821_v57 = vadd.f32 %v820_v24, %v731_v49 }
 0x3e0   :  { %v846_v29 = vadd.f32 %v1833_v28, %v821_v57 }
 0x3e2   :  { %v862_v51 = vmax.f32 %v846_v29, 0.0 }
 0x3e5   :  { %v822_v9 = vpop.f32.mrf.mxu3 }
 0x3e6   :  { %v823_v37 = vadd.f32 %v822_v9, %v733_v59 }
 0x3e8   :  { %v847_v39 = vadd.f32 %v1833_v28, %v823_v37 }
 0x3ea   :  { %v863_v62 = vmax.f32 %v847_v39, 0.0 }
 0x3ec   :  { %v873_v22 = vpack.c.bf16 %v863_v62, %v862_v51 }
 0x3ed   :  { %v825_v36 = vpop.f32.mrf.mxu3 }
 0x3ee   :  { %1243 = vmatmul.msk.bf16.gmra.mxu0 %vm329_vm3, %v873_v22  ;;  %v826_v4 = vadd.f32 %v825_v36, %v735_v53 }
 0x3f0   :  { %v848_v47 = vadd.f32 %v1833_v28, %v826_v4 }
 0x3f2   :  { %v864_v38 = vmax.f32 %v848_v47, 0.0 }
 0x3f5   :  { %v827_v45 = vpop.f32.mrf.mxu3 }
 0x3f6   :  { %v828_v50 = vadd.f32 %v827_v45, %v737_v15 }
 0x3f8   :  { %v849_v54 = vadd.f32 %v1833_v28, %v828_v50 }
 0x3fa   :  { %v865_v44 = vmax.f32 %v849_v54, 0.0 }
 0x3fc   :  { %v874_v56 = vpack.c.bf16 %v865_v44, %v864_v38 }
 0x3fe   :  { %v830_v11 = vpop.f32.mrf.mxu3  ;;  %1244 = vmatmul.msk.bf16.gmra.mxu0 %vm329_vm3, %v874_v56 }
 0x3ff   :  { %v831_v40 = vadd.f32 %v830_v11, %v739_v12 }
 0x401   :  { %v850_v13 = vadd.f32 %v1833_v28, %v831_v40 }
 0x403   :  { %v866_v2 = vmax.f32 %v850_v13, 0.0 }
 0x406   :  { %v832_v10 = vpop.f32.mrf.mxu3 }
 0x407   :  { %v833_v58 = vadd.f32 %v832_v10, %v741_v60 }
 0x409   :  { %v851_v61 = vadd.f32 %v1833_v28, %v833_v58 }
 0x40b   :  { %v867_v7 = vmax.f32 %v851_v61, 0.0 }
 0x40d   :  { %v875_v8 = vpack.c.bf16 %v867_v7, %v866_v2 }
 0x40f   :  { %1245 = vmatmul.msk.bf16.gmra.mxu0 %vm329_vm3, %v875_v8 }
 0x413   :  { %v926_v33 = vpop.f32.mrf.mxu0 }
 0x414   :  { %v927_v18 = vadd.f32 %v926_v33, %v1865_v20 }
 0x416   :  { %v966_v28 = vmax.f32 %v927_v18, 0.0 }
 0x418   :  { %v983_v48 = vmul.f32 %v1869_v46, %v966_v28 }
 0x41a   :  { %v999_v19 = vsel %vm329_vm3, %v983_v48, 0.0 }
 0x41b   :  { %v928_v0 = vpop.f32.mrf.mxu0  ;;  %1000 = vadd.xlane.f32.xlu2 %v999_v19 }
 0x41c   :  { %v929_v5 = vadd.f32 %v928_v0, %v1865_v20 }
 0x41e   :  { %v967_v16 = vmax.f32 %v929_v5, 0.0 }
 0x420   :  { %v984_v17 = vmul.f32 %v1869_v46, %v967_v16 }
 0x422   :  { %v1002_v32 = vsel %vm329_vm3, %v984_v17, 0.0 }
 0x423   :  { %1003 = vadd.xlane.f32.xlu0 %v1002_v32 }
 0x42b   :  { %v931_v1 = vpop.f32.mrf.mxu0 }
 0x42c   :  { %v932_v35 = vadd.f32 %v931_v1, %v1865_v20 }
 0x42e   :  { %v968_v21 = vmax.f32 %v932_v35, 0.0 }
 0x430   :  { %v985_v27 = vmul.f32 %v1869_v46, %v968_v21 }
 0x432   :  { %v1005_v30 = vsel %vm329_vm3, %v985_v27, 0.0 }
 0x433   :  { %v933_v31 = vpop.f32.mrf.mxu0  ;;  %1006 = vadd.xlane.f32.xlu1 %v1005_v30 }
 0x434   :  { %v934_v41 = vadd.f32 %v933_v31, %v1865_v20 }
 0x436   :  { %v969_v43 = vmax.f32 %v934_v41, 0.0 }
 0x438   :  { %v986_v34 = vmul.f32 %v1869_v46, %v969_v43  ;;  %v1917_v43 = vperm.slane %v1862_v6, 5 }
 0x43a   :  { %v1008_v25 = vsel %vm329_vm3, %v986_v34, 0.0 }
 0x43b   :  { %1009 = vadd.xlane.f32.xlu2 %v1008_v25  ;;  %v936_v26 = vpop.f32.mrf.mxu0 }
 0x43c   :  { %v937_v3 = vadd.f32 %v936_v26, %v1865_v20 }
 0x43e   :  { %v970_v52 = vmax.f32 %v937_v3, 0.0 }
 0x440   :  { %v987_v63 = vmul.f32 %v1869_v46, %v970_v52 }
 0x442   :  { %v1011_v55 = vsel %vm329_vm3, %v987_v63, 0.0 }
 0x443   :  { %v938_v14 = vpop.f32.mrf.mxu0  ;;  %1012 = vadd.xlane.f32.xlu2 %v1011_v55 }
 0x444   :  { %v939_v42 = vadd.f32 %v938_v14, %v1865_v20 }
 0x446   :  { %v971_v23 = vmax.f32 %v939_v42, 0.0 }
 0x448   :  { %v988_v24 = vmul.f32 %v1869_v46, %v971_v23 }
 0x44a   :  { %v1014_v49 = vsel %vm329_vm3, %v988_v24, 0.0 }
 0x44b   :  { %v941_v57 = vpop.f32.mrf.mxu0  ;;  %1015 = vadd.xlane.f32.xlu0 %v1014_v49 }
 0x44c   :  { %v942_v59 = vadd.f32 %v941_v57, %v1865_v20 }
 0x44e   :  { %v972_v9 = vmax.f32 %v942_v59, 0.0 }
 0x450   :  { %v989_v29 = vmul.f32 %v1869_v46, %v972_v9 }
 0x452   :  { %v1017_v37 = vsel %vm329_vm3, %v989_v29, 0.0 }
 0x453   :  { %v943_v39 = vpop.f32.mrf.mxu0  ;;  %1018 = vadd.xlane.f32.xlu1 %v1017_v37 }
 0x454   :  { %v944_v51 = vadd.f32 %v943_v39, %v1865_v20 }
 0x456   :  { %v973_v62 = vmax.f32 %v944_v51, 0.0 }
 0x458   :  { %v990_v22 = vmul.f32 %v1869_v46, %v973_v62 }
 0x45a   :  { %v1020_v36 = vsel %vm329_vm3, %v990_v22, 0.0 }
 0x45b   :  { %1021 = vadd.xlane.f32.xlu2 %v1020_v36  ;;  %v946_v53 = vpop.f32.mrf.mxu0 }
 0x45c   :  { %v947_v4 = vadd.f32 %v946_v53, %v1865_v20 }
 0x45e   :  { %v974_v15 = vmax.f32 %v947_v4, 0.0 }
 0x460   :  { %v991_v45 = vmul.f32 %v1869_v46, %v974_v15 }
 0x462   :  { %v1023_v47 = vsel %vm329_vm3, %v991_v45, 0.0 }
 0x463   :  { %v948_v50 = vpop.f32.mrf.mxu0  ;;  %1024 = vadd.xlane.f32.xlu0 %v1023_v47 }
 0x464   :  { %v949_v54 = vadd.f32 %v948_v50, %v1865_v20 }
 0x466   :  { %v975_v38 = vmax.f32 %v949_v54, 0.0 }
 0x468   :  { %v992_v44 = vmul.f32 %v1869_v46, %v975_v38 }
 0x46a   :  { %v1026_v56 = vsel %vm329_vm3, %v992_v44, 0.0 }
 0x46b   :  { %1027 = vadd.xlane.f32.xlu1 %v1026_v56  ;;  %v951_v11 = vpop.f32.mrf.mxu0 }
 0x46c   :  { %v952_v12 = vadd.f32 %v951_v11, %v1865_v20 }
 0x46e   :  { %v976_v40 = vmax.f32 %v952_v12, 0.0 }
 0x470   :  { %v993_v60 = vmul.f32 %v1869_v46, %v976_v40 }
 0x472   :  { %v1029_v10 = vsel %vm329_vm3, %v993_v60, 0.0 }
 0x473   :  { %v953_v13 = vpop.f32.mrf.mxu0  ;;  %1030 = vadd.xlane.f32.xlu2 %v1029_v10 }
 0x474   :  { %v954_v58 = vadd.f32 %v953_v13, %v1865_v20 }
 0x476   :  { %v977_v61 = vmax.f32 %v954_v58, 0.0 }
 0x478   :  { %v994_v2 = vmul.f32 %v1869_v46, %v977_v61 }
 0x47a   :  { %v1032_v7 = vsel %vm329_vm3, %v994_v2, 0.0 }
 0x47b   :  { %v956_v8 = vpop.f32.mrf.mxu0  ;;  %1033 = vadd.xlane.f32.xlu0 %v1032_v7 }
 0x47c   :  { %v957_v33 = vadd.f32 %v956_v8, %v1865_v20 }
 0x47e   :  { %v978_v18 = vmax.f32 %v957_v33, 0.0 }
 0x480   :  { %v995_v28 = vmul.f32 %v1869_v46, %v978_v18 }
 0x482   :  { %v1035_v48 = vsel %vm329_vm3, %v995_v28, 0.0 }
 0x483   :  { %v958_v19 = vpop.f32.mrf.mxu0  ;;  %1036 = vadd.xlane.f32.xlu1 %v1035_v48 }
 0x484   :  { %v959_v0 = vadd.f32 %v958_v19, %v1865_v20 }
 0x486   :  { %v979_v5 = vmax.f32 %v959_v0, 0.0 }
 0x488   :  { %v996_v16 = vmul.f32 %v1869_v46, %v979_v5 }
 0x48a   :  { %v1038_v17 = vsel %vm329_vm3, %v996_v16, 0.0 }
 0x48b   :  { %1039 = vadd.xlane.f32.xlu2 %v1038_v17 }
 0x48c   :  { %v961_v32 = vpop.f32.mrf.mxu0 }
 0x48d   :  { %v962_v1 = vadd.f32 %v961_v32, %v1865_v20 }
 0x48e   :  { %v1001_v25 = vpop.xlane.xlu2 %1000 }
 0x48f   :  { %v980_v35 = vmax.f32 %v962_v1, 0.0  ;;  %v1048_v3 = vadd.f32 %v1917_v43, %v1001_v25 }
 0x491   :  { %v997_v21 = vmul.f32 %v1869_v46, %v980_v35  ;;  %v1064_v63 = vmax.f32 %v1048_v3, 0.0 }
 0x493   :  { %v1041_v27 = vsel %vm329_vm3, %v997_v21, 0.0 }
 0x494   :  { %v963_v30 = vpop.f32.mrf.mxu0  ;;  %1042 = vadd.xlane.f32.xlu0 %v1041_v27 }
 0x495   :  { %v964_v31 = vadd.f32 %v963_v30, %v1865_v20 }
 0x496   :  { %v1004_v52 = vpop.xlane.xlu0 %1003 }
 0x497   :  { %v981_v41 = vmax.f32 %v964_v31, 0.0  ;;  %v1049_v55 = vadd.f32 %v1917_v43, %v1004_v52 }
 0x499   :  { %v998_v34 = vmul.f32 %v1869_v46, %v981_v41  ;;  %v1065_v20 = vmax.f32 %v1049_v55, 0.0 }
 0x49b   :  { %v1044_v26 = vsel %vm329_vm3, %v998_v34, 0.0 }
 0x49c   :  { %1045 = vadd.xlane.f32.xlu1 %v1044_v26 }
 0x4a3   :  { %1113 = vrot.lane.b32.xlu2 %v1064_v63, %s1304_s1 }
 0x4a6   :  { %v1007_v6 = vpop.xlane.xlu1 %1006 }
 0x4a7   :  { %v1050_v46 = vadd.f32 %v1917_v43, %v1007_v6 }
 0x4a8   :  { %1115 = vrot.lane.b32.xlu0 %v1065_v20, %s1304_s1 }
 0x4a9   :  { %v1066_v24 = vmax.f32 %v1050_v46, 0.0 }
 0x4ae   :  { %v1010_v14 = vpop.xlane.xlu2 %1009 }
 0x4af   :  { %v1051_v42 = vadd.f32 %v1917_v43, %v1010_v14 }
 0x4b1   :  { %v1067_v23 = vmax.f32 %v1051_v42, 0.0 }
 0x4b3   :  { %1119 = vrot.lane.b32.xlu0 %v1067_v23, %s1304_s1 }
 0x4b5   :  { %1117 = vrot.lane.b32.xlu1 %v1066_v24, %s1304_s1 }
 0x4b6   :  { %v1013_v49 = vpop.xlane.xlu2 %1012 }
 0x4b7   :  { %v1052_v57 = vadd.f32 %v1917_v43, %v1013_v49 }
 0x4b9   :  { %v1068_v59 = vmax.f32 %v1052_v57, 0.0 }
 0x4bb   :  { %1121 = vrot.lane.b32.xlu2 %v1068_v59, %s1304_s1 }
 0x4be   :  { %v1016_v9 = vpop.xlane.xlu0 %1015 }
 0x4bf   :  { %v1053_v29 = vadd.f32 %v1917_v43, %v1016_v9 }
 0x4c1   :  { %v1069_v37 = vmax.f32 %v1053_v29, 0.0 }
 0x4c3   :  { %1123 = vrot.lane.b32.xlu1 %v1069_v37, %s1304_s1 }
 0x4c6   :  { %v1019_v39 = vpop.xlane.xlu1 %1018 }
 0x4c7   :  { %v1054_v51 = vadd.f32 %v1917_v43, %v1019_v39 }
 0x4c9   :  { %v1070_v62 = vmax.f32 %v1054_v51, 0.0 }
 0x4cb   :  { %1125 = vrot.lane.b32.xlu0 %v1070_v62, %s1304_s1 }
 0x4ce   :  { %v1022_v22 = vpop.xlane.xlu2 %1021 }
 0x4cf   :  { %v1055_v36 = vadd.f32 %v1917_v43, %v1022_v22 }
 0x4d1   :  { %v1071_v53 = vmax.f32 %v1055_v36, 0.0 }
 0x4d3   :  { %1127 = vrot.lane.b32.xlu2 %v1071_v53, %s1304_s1 }
 0x4d6   :  { %v1025_v4 = vpop.xlane.xlu0 %1024 }
 0x4d7   :  { %v1056_v15 = vadd.f32 %v1917_v43, %v1025_v4 }
 0x4d9   :  { %v1072_v45 = vmax.f32 %v1056_v15, 0.0 }
 0x4db   :  { %1129 = vrot.lane.b32.xlu1 %v1072_v45, %s1304_s1 }
 0x4de   :  { %v1028_v47 = vpop.xlane.xlu1 %1027 }
 0x4df   :  { %v1057_v50 = vadd.f32 %v1917_v43, %v1028_v47 }
 0x4e1   :  { %v1073_v54 = vmax.f32 %v1057_v50, 0.0 }
 0x4e3   :  { %1131 = vrot.lane.b32.xlu0 %v1073_v54, %s1304_s1 }
 0x4e6   :  { %v1031_v38 = vpop.xlane.xlu2 %1030 }
 0x4e7   :  { %v1058_v44 = vadd.f32 %v1917_v43, %v1031_v38 }
 0x4e9   :  { %v1074_v56 = vmax.f32 %v1058_v44, 0.0 }
 0x4eb   :  { %1133 = vrot.lane.b32.xlu2 %v1074_v56, %s1304_s1 }
 0x4ee   :  { %v1034_v11 = vpop.xlane.xlu0 %1033 }
 0x4ef   :  { %v1059_v12 = vadd.f32 %v1917_v43, %v1034_v11 }
 0x4f1   :  { %v1075_v40 = vmax.f32 %v1059_v12, 0.0 }
 0x4f3   :  { %1135 = vrot.lane.b32.xlu1 %v1075_v40, %s1304_s1 }
 0x4f6   :  { %v1037_v60 = vpop.xlane.xlu1 %1036 }
 0x4f7   :  { %v1060_v10 = vadd.f32 %v1917_v43, %v1037_v60 }
 0x4f9   :  { %v1076_v13 = vmax.f32 %v1060_v10, 0.0 }
 0x4fb   :  { %1137 = vrot.lane.b32.xlu0 %v1076_v13, %s1304_s1 }
 0x4fe   :  { %v1040_v58 = vpop.xlane.xlu2 %1039 }
 0x4ff   :  { %v1061_v61 = vadd.f32 %v1917_v43, %v1040_v58 }
 0x501   :  { %v1077_v2 = vmax.f32 %v1061_v61, 0.0 }
 0x503   :  { %1139 = vrot.lane.b32.xlu2 %v1077_v2, %s1304_s1 }
 0x506   :  { %v1114_v7 = vpop.permute.xlu2 %1113 }
 0x507   :  { %1162 = vst.msk [vmem:[%s2022_s7] sm:$0xff] %vm1161_vm6, %v1114_v7  ;;  %v1043_v8 = vpop.xlane.xlu0 %1042 }
 0x508   :  { %v1062_v33 = vadd.f32 %v1917_v43, %v1043_v8 }
 0x50a   :  { %v1078_v18 = vmax.f32 %v1062_v33, 0.0 }
 0x50c   :  { %1141 = vrot.lane.b32.xlu1 %v1078_v18, %s1304_s1 }
 0x50f   :  { %v1046_v28 = vpop.xlane.xlu1 %1045 }
 0x510   :  { %v1063_v48 = vadd.f32 %v1917_v43, %v1046_v28 }
 0x512   :  { %v1079_v19 = vmax.f32 %v1063_v48, 0.0 }
 0x514   :  { %1143 = vrot.lane.b32.xlu0 %v1079_v19, %s1304_s1 }
 0x515   :  { %v1122_v0 = vpop.permute.xlu2 %1121 }
 0x516   :  { %1166 = vst.msk [vmem:[%s2022_s7 + $0x20] sm:$0xff] %vm1161_vm6, %v1122_v0 }
 0x51a   :  { %v1116_v5 = vpop.permute.xlu0 %1115 }
 0x51b   :  { %1163 = vst.msk [vmem:[%s2022_s7 + $0x8] sm:$0xff] %vm1161_vm6, %v1116_v5 }
 0x525   :  { %v1120_v16 = vpop.permute.xlu0 %1119 }
 0x526   :  { %1165 = vst.msk [vmem:[%s2022_s7 + $0x18] sm:$0xff] %vm1161_vm6, %v1120_v16 }
 0x527   :  { %v1118_v17 = vpop.permute.xlu1 %1117 }
 0x528   :  { %1164 = vst.msk [vmem:[%s2022_s7 + $0x10] sm:$0xff] %vm1161_vm6, %v1118_v17 }
 0x52d   :  { %v1128_v32 = vpop.permute.xlu2 %1127 }
 0x52e   :  { %1169 = vst.msk [vmem:[%s2022_s7 + $0x38] sm:$0xff] %vm1161_vm6, %v1128_v32 }
 0x535   :  { %v1124_v1 = vpop.permute.xlu1 %1123 }
 0x536   :  { %1167 = vst.msk [vmem:[%s2022_s7 + $0x28] sm:$0xff] %vm1161_vm6, %v1124_v1 }
 0x53d   :  { %v1126_v35 = vpop.permute.xlu0 %1125 }
 0x53e   :  { %1168 = vst.msk [vmem:[%s2022_s7 + $0x30] sm:$0xff] %vm1161_vm6, %v1126_v35 }
 0x545   :  { %v1134_v21 = vpop.permute.xlu2 %1133 }
 0x546   :  { %1172 = vst.msk [vmem:[%s2022_s7 + $0x50] sm:$0xff] %vm1161_vm6, %v1134_v21 }
 0x54d   :  { %v1130_v27 = vpop.permute.xlu1 %1129 }
 0x54e   :  { %1170 = vst.msk [vmem:[%s2022_s7 + $0x40] sm:$0xff] %vm1161_vm6, %v1130_v27 }
 0x555   :  { %v1132_v30 = vpop.permute.xlu0 %1131 }
 0x556   :  { %1171 = vst.msk [vmem:[%s2022_s7 + $0x48] sm:$0xff] %vm1161_vm6, %v1132_v30 }
 0x55d   :  { %v1140_v31 = vpop.permute.xlu2 %1139 }
 0x55e   :  { %1175 = vst.msk [vmem:[%s2022_s7 + $0x68] sm:$0xff] %vm1161_vm6, %v1140_v31 }
 0x565   :  { %v1136_v41 = vpop.permute.xlu1 %1135 }
 0x566   :  { %1173 = vst.msk [vmem:[%s2022_s7 + $0x58] sm:$0xff] %vm1161_vm6, %v1136_v41 }
 0x56d   :  { %v1138_v43 = vpop.permute.xlu0 %1137 }
 0x56e   :  { %1174 = vst.msk [vmem:[%s2022_s7 + $0x60] sm:$0xff] %vm1161_vm6, %v1138_v43 }
 0x57e   :  { %v1142_v34 = vpop.permute.xlu1 %1141 }
 0x57f   :  { %1176 = vst.msk [vmem:[%s2022_s7 + $0x70] sm:$0xff] %vm1161_vm6, %v1142_v34 }
 0x586   :  { %v1144_v25 = vpop.permute.xlu0 %1143 }
 0x587   :  { %1177 = vst.msk [vmem:[%s2022_s7 + $0x78] sm:$0xff] %vm1161_vm6, %v1144_v25 }

</bundles_post_ra>
